<compile_context>
chip_gen: v7x
topology: tpu7x:2x2x1
jax: 0.10.0
libtpu: 0.0.40
codegen_flags: <defaults>
</compile_context>

<pallas_src>
import functools
import math

import jax
import jax.numpy as jnp
from jax import lax
from jax.experimental import pallas as pl
from jax.experimental.pallas import tpu as pltpu


def bottle2neck_kernel(x_ref, w1_ref, wk_ref, w3_ref, bias_ref, o_ref,
                       cat_ref, taps_ref, *, H, W, width, num_scales, scale):
    f32, bf16 = jnp.float32, jnp.bfloat16
    NPB = x_ref.shape[1]                 # images_per_step * H * W (image aligned)
    WS = width * scale
    n_bias = bias_ref.shape[0]

    # conv1 (1x1, BN scale pre-folded into weights) + bias + ReLU -> bf16 cat scratch
    out1 = jnp.dot(w1_ref[...], x_ref[...], preferred_element_type=f32)
    cat_ref[...] = jnp.maximum(out1 + bias_ref[0:WS, :], 0.0).astype(bf16)

    # Hoisted boundary masks for the 9 taps of a 3x3 / padding=1 conv.  Lanes are
    # flattened (img, h, w); masks also kill cross-image / roll-wraparound reads.
    pos = lax.broadcasted_iota(jnp.int32, (width, NPB), 1)
    if (W & (W - 1)) == 0 and (H & (H - 1)) == 0:
        wcol = pos & (W - 1)
        hrow = (pos >> (W.bit_length() - 1)) & (H - 1)
    else:
        # TODO(synk): verify vector s32 % // lowering for non power-of-two H/W.
        wcol = pos % W
        hrow = (pos // W) % H
    ok = {-1: {"h": hrow != 0, "w": wcol != 0},
          +1: {"h": hrow != H - 1, "w": wcol != W - 1}}
    tap_mask = {}
    for dh in (-1, 0, 1):
        for dw in (-1, 0, 1):
            m = None
            if dh != 0:
                m = ok[dh]["h"]
            if dw != 0:
                m = ok[dw]["w"] if m is None else jnp.logical_and(m, ok[dw]["w"])
            tap_mask[(dh, dw)] = m

    # Per-scale 3x3 conv (im2col via pltpu.roll into bf16 taps scratch) + bias + ReLU.
    for i in range(num_scales):
        spx_i = cat_ref[i * width:(i + 1) * width, :].astype(f32)
        if i == 0:
            sp = spx_i
        else:
            # spo_{i-1} was written back into cat rows (i-1)*width .. i*width
            sp = cat_ref[(i - 1) * width:i * width, :].astype(f32) + spx_i

        for a in range(3):               # kh, dh = a - 1
            for b in range(3):           # kw, dw = b - 1
                dh, dw = a - 1, b - 1
                off = dh * W + dw
                tap = sp if off == 0 else pltpu.roll(sp, shift=(-off) % NPB, axis=1)
                m = tap_mask[(dh, dw)]
                if m is not None:
                    tap = jnp.where(m, tap, 0.0)
                t = a * 3 + b
                taps_ref[t * width:(t + 1) * width, :] = tap.astype(bf16)

        y = jnp.dot(wk_ref[i], taps_ref[...], preferred_element_type=f32)
        bk_i = bias_ref[WS + i * width:WS + (i + 1) * width, :]
        cat_ref[i * width:(i + 1) * width, :] = jnp.maximum(y + bk_i, 0.0).astype(bf16)

    # Rows [num_scales*width, WS) of cat still hold spx[-1] (pass-through chunk).
    # TODO(synk): is_first=True would apply AvgPool2d(3, stride, pad=1) to it here.

    # conv3 (1x1, BN scale pre-folded) + bias + identity shortcut + ReLU.
    out3 = jnp.dot(w3_ref[...], cat_ref[...], preferred_element_type=f32)
    b3 = bias_ref[WS + num_scales * width:n_bias, :]
    o_ref[...] = jnp.maximum(out3 + b3 + x_ref[...].astype(f32), 0.0)


def bottle2neck_pallas(x_nchw, p, *, width, scale, num_scales,
                       images_per_step=None, is_first=False):
    assert not is_first, "only the stride=1 / downsample=None path is implemented"
    N, Cin, H, W = x_nchw.shape
    P = H * W
    WS = width * scale
    Cout = p["w3s"].shape[0]
    assert Cin == Cout, "identity shortcut needs inplanes == planes * expansion"

    if images_per_step is None:
        images_per_step = N
    NB = images_per_step
    assert N % NB == 0
    NPB = NB * P
    assert NPB % 128 == 0 and Cin % 8 == 0 and width % 8 == 0

    # Batch-on-lanes layout: (Cin, N*P) bf16 input, (Cout, N*P) f32 output.
    # The wrapper transpose is layout plumbing only; every in-kernel tensor is
    # lane-dense and the output store is unmasked.
    x_cl = jnp.transpose(x_nchw.reshape(N, Cin, P), (1, 0, 2)).reshape(Cin, N * P)
    x_cl = x_cl.astype(jnp.bfloat16)

    kfn = functools.partial(bottle2neck_kernel, H=H, W=W, width=width,
                            num_scales=num_scales, scale=scale)
    n_bias = WS + num_scales * width + Cout

    out_cl = pl.pallas_call(
        kfn,
        out_shape=jax.ShapeDtypeStruct((Cout, N * P), jnp.float32),
        grid=(N // NB,),
        in_specs=[
            pl.BlockSpec((Cin, NPB), lambda j: (0, j)),
            pl.BlockSpec((WS, Cin), lambda j: (0, 0)),
            pl.BlockSpec((num_scales, width, 9 * width), lambda j: (0, 0, 0)),
            pl.BlockSpec((Cout, WS), lambda j: (0, 0)),
            pl.BlockSpec((n_bias, 1), lambda j: (0, 0)),
        ],
        out_specs=pl.BlockSpec((Cout, NPB), lambda j: (0, j)),
        scratch_shapes=[
            pltpu.VMEM((WS, NPB), jnp.bfloat16),          # cat (conv1 out / spo)
            pltpu.VMEM((9 * width, NPB), jnp.bfloat16),   # im2col taps
        ],
        # VMEM use is tiny here; for production tiles set vmem_limit_bytes
        # explicitly (v7x: 64 MiB physical / 32 MiB scoped default) and keep the
        # parallel grid >= 2 and even so both v7x TensorCores get work.
        compiler_params=pltpu.CompilerParams(dimension_semantics=("parallel",)),
    )(x_cl, p["w1s"], p["wks"], p["w3s"], p["bias"])

    return out_cl.reshape(Cout, N, P).transpose(1, 0, 2).reshape(N, Cout, H, W)


def make_params(key, inplanes, planes, base_width=64, scale=4, expansion=4):
    width = int(math.floor(planes * (base_width / 64.0)))
    num_scales = max(1, scale - 1)
    WS = width * scale
    out_planes = planes * expansion
    ks = jax.random.split(key, 12)
    eps = 1e-5

    def bn_fold(kg, kb, km, kv, n):
        gamma = jax.random.uniform(kg, (n,), jnp.float32, 0.5, 1.5)
        beta = 0.1 * jax.random.normal(kb, (n,), jnp.float32)
        mean = 0.1 * jax.random.normal(km, (n,), jnp.float32)
        var = jax.random.uniform(kv, (n,), jnp.float32, 0.5, 1.5)
        s = gamma / jnp.sqrt(var + eps)
        return s, beta - mean * s

    # conv1: torch (WS, Cin, 1, 1) -> (WS, Cin); fold bn1 scale into weight rows.
    w1 = 0.1 * jax.random.normal(ks[0], (WS, inplanes), jnp.float32)
    s1, b1 = bn_fold(ks[1], ks[2], ks[3], ks[4], WS)
    w1s = (s1[:, None] * w1).astype(jnp.bfloat16)

    # per-scale 3x3 convs: torch OIHW (width, width, 3, 3); fold bn scale per O.
    wk_oihw = 0.1 * jax.random.normal(ks[5], (num_scales, width, width, 3, 3),
                                      jnp.float32)
    bnkeys = jax.random.split(ks[6], num_scales * 4)
    sk_l, bk_l = [], []
    for i in range(num_scales):
        s_, b_ = bn_fold(*bnkeys[4 * i:4 * i + 4], width)
        sk_l.append(s_)
        bk_l.append(b_)
    sk = jnp.stack(sk_l)                              # (ns, width)
    bk = jnp.concatenate(bk_l)                        # (ns*width,)
    wk_oihw_s = wk_oihw * sk[:, :, None, None, None]
    # im2col layout: rows = c_out, cols = (kh*3 + kw)*width + c_in
    wks = jnp.transpose(wk_oihw_s, (0, 1, 3, 4, 2)).reshape(
        num_scales, width, 9 * width).astype(jnp.bfloat16)
    # HWIO layout for the lax.conv reference (same folded+bf16 values)
    wks_hwio = jnp.transpose(wk_oihw_s, (0, 3, 4, 2, 1)).astype(jnp.bfloat16)

    # conv3: torch (out_planes, WS, 1, 1) -> (out_planes, WS).
    # NOTE: the module's zero_init_last() zeroes bn3.weight (gamma); we use a
    # nonzero synthetic gamma so the conv3 path is numerically exercised.
    w3 = 0.1 * jax.random.normal(ks[7], (out_planes, WS), jnp.float32)
    s3, b3 = bn_fold(ks[8], ks[9], ks[10], ks[11], out_planes)
    w3s = (s3[:, None] * w3).astype(jnp.bfloat16)

    bias = jnp.concatenate([b1, bk, b3])[:, None].astype(jnp.float32)

    params = dict(w1s=w1s, wks=wks, wks_hwio=wks_hwio, w3s=w3s, bias=bias)
    return params, width, num_scales


def bottle2neck_ref(x_nchw, p, *, width, scale, num_scales):
    """Pure-JAX reference mirroring the PyTorch forward (eval-mode BN) with the
    kernel's mixed-precision policy: bf16 x / weights / cat activations, f32
    accumulation and f32 element-wise math."""
    f32, bf16 = jnp.float32, jnp.bfloat16
    relu = lambda t: jnp.maximum(t, 0.0)
    WS = width * scale
    b1 = p["bias"][:WS, 0]
    b3 = p["bias"][WS + num_scales * width:, 0]

    x = jnp.transpose(x_nchw.astype(bf16), (0, 2, 3, 1))          # NHWC, bf16 I/O
    out = jnp.einsum("nhwc,dc->nhwd", x, p["w1s"], preferred_element_type=f32)
    out = relu(out + b1).astype(bf16)                             # cat stored bf16
    spx = [out[..., i * width:(i + 1) * width] for i in range(scale)]
    spo = []
    for i in range(num_scales):
        if i == 0:
            sp = spx[i].astype(f32)
        else:
            sp = spo[-1].astype(f32) + spx[i].astype(f32)
        sp = lax.conv_general_dilated(
            sp.astype(bf16), p["wks_hwio"][i], (1, 1), "SAME",
            dimension_numbers=("NHWC", "HWIO", "NHWC"),
            preferred_element_type=f32)
        bk_i = p["bias"][WS + i * width:WS + (i + 1) * width, 0]
        spo.append(relu(sp + bk_i).astype(bf16))
    spo.append(spx[-1])
    cat = jnp.concatenate(spo, -1)
    out3 = jnp.einsum("nhwc,dc->nhwd", cat, p["w3s"], preferred_element_type=f32)
    y = relu(out3 + b3 + x.astype(f32))
    return jnp.transpose(y, (0, 3, 1, 2))


if __name__ == "__main__":
    # inplanes must equal planes * expansion for the identity shortcut
    inplanes, planes, base_width, scale = 32, 8, 64, 4
    N, H, W = 2, 16, 16

    key = jax.random.PRNGKey(0)
    kx, kp = jax.random.split(key)
    x = jax.random.normal(kx, (N, inplanes, H, W), jnp.float32)   # NCHW like PyTorch

    params, width, num_scales = make_params(kp, inplanes, planes, base_width, scale)

    y = bottle2neck_pallas(x, params, width=width, scale=scale,
                           num_scales=num_scales, images_per_step=2)
    y = jax.block_until_ready(y)

    y_ref = bottle2neck_ref(x, params, width=width, scale=scale,
                            num_scales=num_scales)
    assert y.shape == (N, planes * 4, H, W)
    err = float(jnp.max(jnp.abs(y - y_ref)))
    # reference mirrors the kernel's bf16 activation rounding; remaining error is
    # f32 accumulation-order noise plus rare 1-ulp bf16 boundary flips.
    if err > 5e-3:
        raise AssertionError(f"kernel/reference mismatch, max abs err = {err}")

    print("KERNEL_OK")
</pallas_src>

<mosaic_0001>
module attributes {stable_mosaic.version = 11 : i64} {
  func.func @bottle2neck_kernel(%arg0: i32, %arg1: memref<32x512xbf16, #tpu.memory_space<vmem>>, %arg2: memref<32x32xbf16, #tpu.memory_space<vmem>>, %arg3: memref<3x8x72xbf16, #tpu.memory_space<vmem>>, %arg4: memref<32x32xbf16, #tpu.memory_space<vmem>>, %arg5: memref<88x1xf32, #tpu.memory_space<vmem>>, %arg6: memref<32x512xf32, #tpu.memory_space<vmem>>, %arg7: memref<32x512xbf16, #tpu.memory_space<vmem>>, %arg8: memref<72x512xbf16, #tpu.memory_space<vmem>>) attributes {dimension_semantics = [#tpu.dimension_semantics<parallel>], iteration_bounds = array<i64: 1>, scalar_prefetch = 0 : i64, scratch_operands = 2 : i64, tpu.core_type = #tpu.core_type<tc>, window_params = [{transform_indices = @transform_0, window_bounds = array<i64: 32, 512>}, {pipeline_mode = #tpu.pipeline_mode<synchronous>, transform_indices = @transform_1, window_bounds = array<i64: 32, 32>}, {pipeline_mode = #tpu.pipeline_mode<synchronous>, transform_indices = @transform_2, window_bounds = array<i64: 3, 8, 72>}, {pipeline_mode = #tpu.pipeline_mode<synchronous>, transform_indices = @transform_3, window_bounds = array<i64: 32, 32>}, {pipeline_mode = #tpu.pipeline_mode<synchronous>, transform_indices = @transform_4, window_bounds = array<i64: 88, 1>}, {transform_indices = @transform_5, window_bounds = array<i64: 32, 512>}]} {
    %c0 = arith.constant 0 : index
    %c0_0 = arith.constant 0 : index
    %0 = vector.load %arg2[%c0, %c0_0] : memref<32x32xbf16, #tpu.memory_space<vmem>>, vector<32x32xbf16>
    %c0_1 = arith.constant 0 : index
    %c0_2 = arith.constant 0 : index
    %1 = vector.load %arg1[%c0_1, %c0_2] : memref<32x512xbf16, #tpu.memory_space<vmem>>, vector<32x512xbf16>
    %cst = arith.constant dense<0.000000e+00> : vector<32x512xf32>
    %2 = tpu.matmul %0, %1, %cst {dimension_numbers = #tpu.dot_dimension_numbers<[1], [0], [0], [1], [0, 0, 1, 1], [], []>} : vector<32x32xbf16>, vector<32x512xbf16>, vector<32x512xf32> -> vector<32x512xf32>
    %c0_3 = arith.constant 0 : index
    %c0_4 = arith.constant 0 : index
    %3 = vector.load %arg5[%c0_3, %c0_4] : memref<88x1xf32, #tpu.memory_space<vmem>>, vector<32x1xf32>
    %4 = vector.broadcast %3 : vector<32x1xf32> to vector<32x512xf32>
    %5 = arith.addf %2, %4 : vector<32x512xf32>
    %cst_5 = arith.constant 0.000000e+00 : f32
    %6 = vector.broadcast %cst_5 : f32 to vector<32x512xf32>
    %7 = arith.maximumf %5, %6 : vector<32x512xf32>
    %8 = arith.truncf %7 : vector<32x512xf32> to vector<32x512xbf16>
    %c0_6 = arith.constant 0 : index
    %c0_7 = arith.constant 0 : index
    %9 = vector.load %arg7[%c0_6, %c0_7] : memref<32x512xbf16, #tpu.memory_space<vmem>>, vector<32x512xbf16>
    tpu.vector_store %arg7[%c0_6, %c0_7], %8 {strides = array<i32>} : memref<32x512xbf16, #tpu.memory_space<vmem>>, vector<32x512xbf16>,
    %10 = tpu.iota {dimensions = array<i32: 1>} : vector<8x512xi32>
    %c15_i32 = arith.constant 15 : i32
    %11 = vector.broadcast %c15_i32 : i32 to vector<8x512xi32>
    %12 = arith.andi %10, %11 : vector<8x512xi32>
    %c4_i32 = arith.constant 4 : i32
    %13 = vector.broadcast %c4_i32 : i32 to vector<8x512xi32>
    %14 = arith.shrsi %10, %13 : vector<8x512xi32>
    %c15_i32_8 = arith.constant 15 : i32
    %15 = vector.broadcast %c15_i32_8 : i32 to vector<8x512xi32>
    %16 = arith.andi %14, %15 : vector<8x512xi32>
    %c0_i32 = arith.constant 0 : i32
    %17 = vector.broadcast %c0_i32 : i32 to vector<8x512xi32>
    %18 = arith.cmpi ne, %16, %17 : vector<8x512xi32>
    %c0_i32_9 = arith.constant 0 : i32
    %19 = vector.broadcast %c0_i32_9 : i32 to vector<8x512xi32>
    %20 = arith.cmpi ne, %12, %19 : vector<8x512xi32>
    %c15_i32_10 = arith.constant 15 : i32
    %21 = vector.broadcast %c15_i32_10 : i32 to vector<8x512xi32>
    %22 = arith.cmpi ne, %16, %21 : vector<8x512xi32>
    %c15_i32_11 = arith.constant 15 : i32
    %23 = vector.broadcast %c15_i32_11 : i32 to vector<8x512xi32>
    %24 = arith.cmpi ne, %12, %23 : vector<8x512xi32>
    %25 = arith.andi %18, %20 : vector<8x512xi1>
    %26 = arith.andi %18, %24 : vector<8x512xi1>
    %27 = arith.andi %22, %20 : vector<8x512xi1>
    %28 = arith.andi %22, %24 : vector<8x512xi1>
    %c0_12 = arith.constant 0 : index
    %c0_13 = arith.constant 0 : index
    %29 = vector.load %arg7[%c0_12, %c0_13] : memref<32x512xbf16, #tpu.memory_space<vmem>>, vector<8x512xbf16>
    %30 = arith.extf %29 : vector<8x512xbf16> to vector<8x512xf32>
    %c17_i32 = arith.constant 17 : i32
    %31 = tpu.dynamic_rotate %30 by %c17_i32 dim 1 : vector<8x512xf32>, i32 -> vector<8x512xf32>
    %cst_14 = arith.constant 0.000000e+00 : f32
    %32 = vector.broadcast %cst_14 : f32 to vector<8x512xf32>
    %33 = arith.select %25, %31, %32 : vector<8x512xi1>, vector<8x512xf32>
    %34 = arith.truncf %33 : vector<8x512xf32> to vector<8x512xbf16>
    %c0_15 = arith.constant 0 : index
    %c0_16 = arith.constant 0 : index
    %35 = vector.load %arg8[%c0_15, %c0_16] : memref<72x512xbf16, #tpu.memory_space<vmem>>, vector<8x512xbf16>
    tpu.vector_store %arg8[%c0_15, %c0_16], %34 {strides = array<i32>} : memref<72x512xbf16, #tpu.memory_space<vmem>>, vector<8x512xbf16>,
    %c16_i32 = arith.constant 16 : i32
    %36 = tpu.dynamic_rotate %30 by %c16_i32 dim 1 : vector<8x512xf32>, i32 -> vector<8x512xf32>
    %cst_17 = arith.constant 0.000000e+00 : f32
    %37 = vector.broadcast %cst_17 : f32 to vector<8x512xf32>
    %38 = arith.select %18, %36, %37 : vector<8x512xi1>, vector<8x512xf32>
    %39 = arith.truncf %38 : vector<8x512xf32> to vector<8x512xbf16>
    %c8 = arith.constant 8 : index
    %c0_18 = arith.constant 0 : index
    %40 = vector.load %arg8[%c8, %c0_18] : memref<72x512xbf16, #tpu.memory_space<vmem>>, vector<8x512xbf16>
    tpu.vector_store %arg8[%c8, %c0_18], %39 {strides = array<i32>} : memref<72x512xbf16, #tpu.memory_space<vmem>>, vector<8x512xbf16>,
    %c15_i32_19 = arith.constant 15 : i32
    %41 = tpu.dynamic_rotate %30 by %c15_i32_19 dim 1 : vector<8x512xf32>, i32 -> vector<8x512xf32>
    %cst_20 = arith.constant 0.000000e+00 : f32
    %42 = vector.broadcast %cst_20 : f32 to vector<8x512xf32>
    %43 = arith.select %26, %41, %42 : vector<8x512xi1>, vector<8x512xf32>
    %44 = arith.truncf %43 : vector<8x512xf32> to vector<8x512xbf16>
    %c16 = arith.constant 16 : index
    %c0_21 = arith.constant 0 : index
    %45 = vector.load %arg8[%c16, %c0_21] : memref<72x512xbf16, #tpu.memory_space<vmem>>, vector<8x512xbf16>
    tpu.vector_store %arg8[%c16, %c0_21], %44 {strides = array<i32>} : memref<72x512xbf16, #tpu.memory_space<vmem>>, vector<8x512xbf16>,
    %c1_i32 = arith.constant 1 : i32
    %46 = tpu.dynamic_rotate %30 by %c1_i32 dim 1 : vector<8x512xf32>, i32 -> vector<8x512xf32>
    %cst_22 = arith.constant 0.000000e+00 : f32
    %47 = vector.broadcast %cst_22 : f32 to vector<8x512xf32>
    %48 = arith.select %20, %46, %47 : vector<8x512xi1>, vector<8x512xf32>
    %49 = arith.truncf %48 : vector<8x512xf32> to vector<8x512xbf16>
    %c24 = arith.constant 24 : index
    %c0_23 = arith.constant 0 : index
    %50 = vector.load %arg8[%c24, %c0_23] : memref<72x512xbf16, #tpu.memory_space<vmem>>, vector<8x512xbf16>
    tpu.vector_store %arg8[%c24, %c0_23], %49 {strides = array<i32>} : memref<72x512xbf16, #tpu.memory_space<vmem>>, vector<8x512xbf16>,
    %51 = arith.truncf %30 : vector<8x512xf32> to vector<8x512xbf16>
    %c32 = arith.constant 32 : index
    %c0_24 = arith.constant 0 : index
    %52 = vector.load %arg8[%c32, %c0_24] : memref<72x512xbf16, #tpu.memory_space<vmem>>, vector<8x512xbf16>
    tpu.vector_store %arg8[%c32, %c0_24], %51 {strides = array<i32>} : memref<72x512xbf16, #tpu.memory_space<vmem>>, vector<8x512xbf16>,
    %c511_i32 = arith.constant 511 : i32
    %53 = tpu.dynamic_rotate %30 by %c511_i32 dim 1 : vector<8x512xf32>, i32 -> vector<8x512xf32>
    %cst_25 = arith.constant 0.000000e+00 : f32
    %54 = vector.broadcast %cst_25 : f32 to vector<8x512xf32>
    %55 = arith.select %24, %53, %54 : vector<8x512xi1>, vector<8x512xf32>
    %56 = arith.truncf %55 : vector<8x512xf32> to vector<8x512xbf16>
    %c40 = arith.constant 40 : index
    %c0_26 = arith.constant 0 : index
    %57 = vector.load %arg8[%c40, %c0_26] : memref<72x512xbf16, #tpu.memory_space<vmem>>, vector<8x512xbf16>
    tpu.vector_store %arg8[%c40, %c0_26], %56 {strides = array<i32>} : memref<72x512xbf16, #tpu.memory_space<vmem>>, vector<8x512xbf16>,
    %c497_i32 = arith.constant 497 : i32
    %58 = tpu.dynamic_rotate %30 by %c497_i32 dim 1 : vector<8x512xf32>, i32 -> vector<8x512xf32>
    %cst_27 = arith.constant 0.000000e+00 : f32
    %59 = vector.broadcast %cst_27 : f32 to vector<8x512xf32>
    %60 = arith.select %27, %58, %59 : vector<8x512xi1>, vector<8x512xf32>
    %61 = arith.truncf %60 : vector<8x512xf32> to vector<8x512xbf16>
    %c48 = arith.constant 48 : index
    %c0_28 = arith.constant 0 : index
    %62 = vector.load %arg8[%c48, %c0_28] : memref<72x512xbf16, #tpu.memory_space<vmem>>, vector<8x512xbf16>
    tpu.vector_store %arg8[%c48, %c0_28], %61 {strides = array<i32>} : memref<72x512xbf16, #tpu.memory_space<vmem>>, vector<8x512xbf16>,
    %c496_i32 = arith.constant 496 : i32
    %63 = tpu.dynamic_rotate %30 by %c496_i32 dim 1 : vector<8x512xf32>, i32 -> vector<8x512xf32>
    %cst_29 = arith.constant 0.000000e+00 : f32
    %64 = vector.broadcast %cst_29 : f32 to vector<8x512xf32>
    %65 = arith.select %22, %63, %64 : vector<8x512xi1>, vector<8x512xf32>
    %66 = arith.truncf %65 : vector<8x512xf32> to vector<8x512xbf16>
    %c56 = arith.constant 56 : index
    %c0_30 = arith.constant 0 : index
    %67 = vector.load %arg8[%c56, %c0_30] : memref<72x512xbf16, #tpu.memory_space<vmem>>, vector<8x512xbf16>
    tpu.vector_store %arg8[%c56, %c0_30], %66 {strides = array<i32>} : memref<72x512xbf16, #tpu.memory_space<vmem>>, vector<8x512xbf16>,
    %c495_i32 = arith.constant 495 : i32
    %68 = tpu.dynamic_rotate %30 by %c495_i32 dim 1 : vector<8x512xf32>, i32 -> vector<8x512xf32>
    %cst_31 = arith.constant 0.000000e+00 : f32
    %69 = vector.broadcast %cst_31 : f32 to vector<8x512xf32>
    %70 = arith.select %28, %68, %69 : vector<8x512xi1>, vector<8x512xf32>
    %71 = arith.truncf %70 : vector<8x512xf32> to vector<8x512xbf16>
    %c64 = arith.constant 64 : index
    %c0_32 = arith.constant 0 : index
    %72 = vector.load %arg8[%c64, %c0_32] : memref<72x512xbf16, #tpu.memory_space<vmem>>, vector<8x512xbf16>
    tpu.vector_store %arg8[%c64, %c0_32], %71 {strides = array<i32>} : memref<72x512xbf16, #tpu.memory_space<vmem>>, vector<8x512xbf16>,
    %c0_33 = arith.constant 0 : index
    %c0_34 = arith.constant 0 : index
    %c0_35 = arith.constant 0 : index
    %73 = vector.load %arg3[%c0_33, %c0_34, %c0_35] : memref<3x8x72xbf16, #tpu.memory_space<vmem>>, vector<1x8x72xbf16>
    %74 = vector.shape_cast %73 : vector<1x8x72xbf16> to vector<8x72xbf16>
    %c0_36 = arith.constant 0 : index
    %c0_37 = arith.constant 0 : index
    %75 = vector.load %arg8[%c0_36, %c0_37] : memref<72x512xbf16, #tpu.memory_space<vmem>>, vector<72x512xbf16>
    %cst_38 = arith.constant dense<0.000000e+00> : vector<8x512xf32>
    %76 = tpu.matmul %74, %75, %cst_38 {dimension_numbers = #tpu.dot_dimension_numbers<[1], [0], [0], [1], [0, 0, 1, 1], [], []>} : vector<8x72xbf16>, vector<72x512xbf16>, vector<8x512xf32> -> vector<8x512xf32>
    %c32_39 = arith.constant 32 : index
    %c0_40 = arith.constant 0 : index
    %77 = vector.load %arg5[%c32_39, %c0_40] : memref<88x1xf32, #tpu.memory_space<vmem>>, vector<8x1xf32>
    %78 = vector.broadcast %77 : vector<8x1xf32> to vector<8x512xf32>
    %79 = arith.addf %76, %78 : vector<8x512xf32>
    %cst_41 = arith.constant 0.000000e+00 : f32
    %80 = vector.broadcast %cst_41 : f32 to vector<8x512xf32>
    %81 = arith.maximumf %79, %80 : vector<8x512xf32>
    %82 = arith.truncf %81 : vector<8x512xf32> to vector<8x512xbf16>
    %c0_42 = arith.constant 0 : index
    %c0_43 = arith.constant 0 : index
    %83 = vector.load %arg7[%c0_42, %c0_43] : memref<32x512xbf16, #tpu.memory_space<vmem>>, vector<8x512xbf16>
    tpu.vector_store %arg7[%c0_42, %c0_43], %82 {strides = array<i32>} : memref<32x512xbf16, #tpu.memory_space<vmem>>, vector<8x512xbf16>,
    %c8_44 = arith.constant 8 : index
    %c0_45 = arith.constant 0 : index
    %84 = vector.load %arg7[%c8_44, %c0_45] : memref<32x512xbf16, #tpu.memory_space<vmem>>, vector<8x512xbf16>
    %85 = arith.extf %84 : vector<8x512xbf16> to vector<8x512xf32>
    %c0_46 = arith.constant 0 : index
    %c0_47 = arith.constant 0 : index
    %86 = vector.load %arg7[%c0_46, %c0_47] : memref<32x512xbf16, #tpu.memory_space<vmem>>, vector<8x512xbf16>
    %87 = arith.extf %86 : vector<8x512xbf16> to vector<8x512xf32>
    %88 = arith.addf %87, %85 : vector<8x512xf32>
    %c17_i32_48 = arith.constant 17 : i32
    %89 = tpu.dynamic_rotate %88 by %c17_i32_48 dim 1 : vector<8x512xf32>, i32 -> vector<8x512xf32>
    %cst_49 = arith.constant 0.000000e+00 : f32
    %90 = vector.broadcast %cst_49 : f32 to vector<8x512xf32>
    %91 = arith.select %25, %89, %90 : vector<8x512xi1>, vector<8x512xf32>
    %92 = arith.truncf %91 : vector<8x512xf32> to vector<8x512xbf16>
    %c0_50 = arith.constant 0 : index
    %c0_51 = arith.constant 0 : index
    %93 = vector.load %arg8[%c0_50, %c0_51] : memref<72x512xbf16, #tpu.memory_space<vmem>>, vector<8x512xbf16>
    tpu.vector_store %arg8[%c0_50, %c0_51], %92 {strides = array<i32>} : memref<72x512xbf16, #tpu.memory_space<vmem>>, vector<8x512xbf16>,
    %c16_i32_52 = arith.constant 16 : i32
    %94 = tpu.dynamic_rotate %88 by %c16_i32_52 dim 1 : vector<8x512xf32>, i32 -> vector<8x512xf32>
    %cst_53 = arith.constant 0.000000e+00 : f32
    %95 = vector.broadcast %cst_53 : f32 to vector<8x512xf32>
    %96 = arith.select %18, %94, %95 : vector<8x512xi1>, vector<8x512xf32>
    %97 = arith.truncf %96 : vector<8x512xf32> to vector<8x512xbf16>
    %c8_54 = arith.constant 8 : index
    %c0_55 = arith.constant 0 : index
    %98 = vector.load %arg8[%c8_54, %c0_55] : memref<72x512xbf16, #tpu.memory_space<vmem>>, vector<8x512xbf16>
    tpu.vector_store %arg8[%c8_54, %c0_55], %97 {strides = array<i32>} : memref<72x512xbf16, #tpu.memory_space<vmem>>, vector<8x512xbf16>,
    %c15_i32_56 = arith.constant 15 : i32
    %99 = tpu.dynamic_rotate %88 by %c15_i32_56 dim 1 : vector<8x512xf32>, i32 -> vector<8x512xf32>
    %cst_57 = arith.constant 0.000000e+00 : f32
    %100 = vector.broadcast %cst_57 : f32 to vector<8x512xf32>
    %101 = arith.select %26, %99, %100 : vector<8x512xi1>, vector<8x512xf32>
    %102 = arith.truncf %101 : vector<8x512xf32> to vector<8x512xbf16>
    %c16_58 = arith.constant 16 : index
    %c0_59 = arith.constant 0 : index
    %103 = vector.load %arg8[%c16_58, %c0_59] : memref<72x512xbf16, #tpu.memory_space<vmem>>, vector<8x512xbf16>
    tpu.vector_store %arg8[%c16_58, %c0_59], %102 {strides = array<i32>} : memref<72x512xbf16, #tpu.memory_space<vmem>>, vector<8x512xbf16>,
    %c1_i32_60 = arith.constant 1 : i32
    %104 = tpu.dynamic_rotate %88 by %c1_i32_60 dim 1 : vector<8x512xf32>, i32 -> vector<8x512xf32>
    %cst_61 = arith.constant 0.000000e+00 : f32
    %105 = vector.broadcast %cst_61 : f32 to vector<8x512xf32>
    %106 = arith.select %20, %104, %105 : vector<8x512xi1>, vector<8x512xf32>
    %107 = arith.truncf %106 : vector<8x512xf32> to vector<8x512xbf16>
    %c24_62 = arith.constant 24 : index
    %c0_63 = arith.constant 0 : index
    %108 = vector.load %arg8[%c24_62, %c0_63] : memref<72x512xbf16, #tpu.memory_space<vmem>>, vector<8x512xbf16>
    tpu.vector_store %arg8[%c24_62, %c0_63], %107 {strides = array<i32>} : memref<72x512xbf16, #tpu.memory_space<vmem>>, vector<8x512xbf16>,
    %109 = arith.truncf %88 : vector<8x512xf32> to vector<8x512xbf16>
    %c32_64 = arith.constant 32 : index
    %c0_65 = arith.constant 0 : index
    %110 = vector.load %arg8[%c32_64, %c0_65] : memref<72x512xbf16, #tpu.memory_space<vmem>>, vector<8x512xbf16>
    tpu.vector_store %arg8[%c32_64, %c0_65], %109 {strides = array<i32>} : memref<72x512xbf16, #tpu.memory_space<vmem>>, vector<8x512xbf16>,
    %c511_i32_66 = arith.constant 511 : i32
    %111 = tpu.dynamic_rotate %88 by %c511_i32_66 dim 1 : vector<8x512xf32>, i32 -> vector<8x512xf32>
    %cst_67 = arith.constant 0.000000e+00 : f32
    %112 = vector.broadcast %cst_67 : f32 to vector<8x512xf32>
    %113 = arith.select %24, %111, %112 : vector<8x512xi1>, vector<8x512xf32>
    %114 = arith.truncf %113 : vector<8x512xf32> to vector<8x512xbf16>
    %c40_68 = arith.constant 40 : index
    %c0_69 = arith.constant 0 : index
    %115 = vector.load %arg8[%c40_68, %c0_69] : memref<72x512xbf16, #tpu.memory_space<vmem>>, vector<8x512xbf16>
    tpu.vector_store %arg8[%c40_68, %c0_69], %114 {strides = array<i32>} : memref<72x512xbf16, #tpu.memory_space<vmem>>, vector<8x512xbf16>,
    %c497_i32_70 = arith.constant 497 : i32
    %116 = tpu.dynamic_rotate %88 by %c497_i32_70 dim 1 : vector<8x512xf32>, i32 -> vector<8x512xf32>
    %cst_71 = arith.constant 0.000000e+00 : f32
    %117 = vector.broadcast %cst_71 : f32 to vector<8x512xf32>
    %118 = arith.select %27, %116, %117 : vector<8x512xi1>, vector<8x512xf32>
    %119 = arith.truncf %118 : vector<8x512xf32> to vector<8x512xbf16>
    %c48_72 = arith.constant 48 : index
    %c0_73 = arith.constant 0 : index
    %120 = vector.load %arg8[%c48_72, %c0_73] : memref<72x512xbf16, #tpu.memory_space<vmem>>, vector<8x512xbf16>
    tpu.vector_store %arg8[%c48_72, %c0_73], %119 {strides = array<i32>} : memref<72x512xbf16, #tpu.memory_space<vmem>>, vector<8x512xbf16>,
    %c496_i32_74 = arith.constant 496 : i32
    %121 = tpu.dynamic_rotate %88 by %c496_i32_74 dim 1 : vector<8x512xf32>, i32 -> vector<8x512xf32>
    %cst_75 = arith.constant 0.000000e+00 : f32
    %122 = vector.broadcast %cst_75 : f32 to vector<8x512xf32>
    %123 = arith.select %22, %121, %122 : vector<8x512xi1>, vector<8x512xf32>
    %124 = arith.truncf %123 : vector<8x512xf32> to vector<8x512xbf16>
    %c56_76 = arith.constant 56 : index
    %c0_77 = arith.constant 0 : index
    %125 = vector.load %arg8[%c56_76, %c0_77] : memref<72x512xbf16, #tpu.memory_space<vmem>>, vector<8x512xbf16>
    tpu.vector_store %arg8[%c56_76, %c0_77], %124 {strides = array<i32>} : memref<72x512xbf16, #tpu.memory_space<vmem>>, vector<8x512xbf16>,
    %c495_i32_78 = arith.constant 495 : i32
    %126 = tpu.dynamic_rotate %88 by %c495_i32_78 dim 1 : vector<8x512xf32>, i32 -> vector<8x512xf32>
    %cst_79 = arith.constant 0.000000e+00 : f32
    %127 = vector.broadcast %cst_79 : f32 to vector<8x512xf32>
    %128 = arith.select %28, %126, %127 : vector<8x512xi1>, vector<8x512xf32>
    %129 = arith.truncf %128 : vector<8x512xf32> to vector<8x512xbf16>
    %c64_80 = arith.constant 64 : index
    %c0_81 = arith.constant 0 : index
    %130 = vector.load %arg8[%c64_80, %c0_81] : memref<72x512xbf16, #tpu.memory_space<vmem>>, vector<8x512xbf16>
    tpu.vector_store %arg8[%c64_80, %c0_81], %129 {strides = array<i32>} : memref<72x512xbf16, #tpu.memory_space<vmem>>, vector<8x512xbf16>,
    %c1 = arith.constant 1 : index
    %c0_82 = arith.constant 0 : index
    %c0_83 = arith.constant 0 : index
    %131 = vector.load %arg3[%c1, %c0_82, %c0_83] : memref<3x8x72xbf16, #tpu.memory_space<vmem>>, vector<1x8x72xbf16>
    %132 = vector.shape_cast %131 : vector<1x8x72xbf16> to vector<8x72xbf16>
    %c0_84 = arith.constant 0 : index
    %c0_85 = arith.constant 0 : index
    %133 = vector.load %arg8[%c0_84, %c0_85] : memref<72x512xbf16, #tpu.memory_space<vmem>>, vector<72x512xbf16>
    %cst_86 = arith.constant dense<0.000000e+00> : vector<8x512xf32>
    %134 = tpu.matmul %132, %133, %cst_86 {dimension_numbers = #tpu.dot_dimension_numbers<[1], [0], [0], [1], [0, 0, 1, 1], [], []>} : vector<8x72xbf16>, vector<72x512xbf16>, vector<8x512xf32> -> vector<8x512xf32>
    %c40_87 = arith.constant 40 : index
    %c0_88 = arith.constant 0 : index
    %135 = vector.load %arg5[%c40_87, %c0_88] : memref<88x1xf32, #tpu.memory_space<vmem>>, vector<8x1xf32>
    %136 = vector.broadcast %135 : vector<8x1xf32> to vector<8x512xf32>
    %137 = arith.addf %134, %136 : vector<8x512xf32>
    %cst_89 = arith.constant 0.000000e+00 : f32
    %138 = vector.broadcast %cst_89 : f32 to vector<8x512xf32>
    %139 = arith.maximumf %137, %138 : vector<8x512xf32>
    %140 = arith.truncf %139 : vector<8x512xf32> to vector<8x512xbf16>
    %c8_90 = arith.constant 8 : index
    %c0_91 = arith.constant 0 : index
    %141 = vector.load %arg7[%c8_90, %c0_91] : memref<32x512xbf16, #tpu.memory_space<vmem>>, vector<8x512xbf16>
    tpu.vector_store %arg7[%c8_90, %c0_91], %140 {strides = array<i32>} : memref<32x512xbf16, #tpu.memory_space<vmem>>, vector<8x512xbf16>,
    %c16_92 = arith.constant 16 : index
    %c0_93 = arith.constant 0 : index
    %142 = vector.load %arg7[%c16_92, %c0_93] : memref<32x512xbf16, #tpu.memory_space<vmem>>, vector<8x512xbf16>
    %143 = arith.extf %142 : vector<8x512xbf16> to vector<8x512xf32>
    %c8_94 = arith.constant 8 : index
    %c0_95 = arith.constant 0 : index
    %144 = vector.load %arg7[%c8_94, %c0_95] : memref<32x512xbf16, #tpu.memory_space<vmem>>, vector<8x512xbf16>
    %145 = arith.extf %144 : vector<8x512xbf16> to vector<8x512xf32>
    %146 = arith.addf %145, %143 : vector<8x512xf32>
    %c17_i32_96 = arith.constant 17 : i32
    %147 = tpu.dynamic_rotate %146 by %c17_i32_96 dim 1 : vector<8x512xf32>, i32 -> vector<8x512xf32>
    %cst_97 = arith.constant 0.000000e+00 : f32
    %148 = vector.broadcast %cst_97 : f32 to vector<8x512xf32>
    %149 = arith.select %25, %147, %148 : vector<8x512xi1>, vector<8x512xf32>
    %150 = arith.truncf %149 : vector<8x512xf32> to vector<8x512xbf16>
    %c0_98 = arith.constant 0 : index
    %c0_99 = arith.constant 0 : index
    %151 = vector.load %arg8[%c0_98, %c0_99] : memref<72x512xbf16, #tpu.memory_space<vmem>>, vector<8x512xbf16>
    tpu.vector_store %arg8[%c0_98, %c0_99], %150 {strides = array<i32>} : memref<72x512xbf16, #tpu.memory_space<vmem>>, vector<8x512xbf16>,
    %c16_i32_100 = arith.constant 16 : i32
    %152 = tpu.dynamic_rotate %146 by %c16_i32_100 dim 1 : vector<8x512xf32>, i32 -> vector<8x512xf32>
    %cst_101 = arith.constant 0.000000e+00 : f32
    %153 = vector.broadcast %cst_101 : f32 to vector<8x512xf32>
    %154 = arith.select %18, %152, %153 : vector<8x512xi1>, vector<8x512xf32>
    %155 = arith.truncf %154 : vector<8x512xf32> to vector<8x512xbf16>
    %c8_102 = arith.constant 8 : index
    %c0_103 = arith.constant 0 : index
    %156 = vector.load %arg8[%c8_102, %c0_103] : memref<72x512xbf16, #tpu.memory_space<vmem>>, vector<8x512xbf16>
    tpu.vector_store %arg8[%c8_102, %c0_103], %155 {strides = array<i32>} : memref<72x512xbf16, #tpu.memory_space<vmem>>, vector<8x512xbf16>,
    %c15_i32_104 = arith.constant 15 : i32
    %157 = tpu.dynamic_rotate %146 by %c15_i32_104 dim 1 : vector<8x512xf32>, i32 -> vector<8x512xf32>
    %cst_105 = arith.constant 0.000000e+00 : f32
    %158 = vector.broadcast %cst_105 : f32 to vector<8x512xf32>
    %159 = arith.select %26, %157, %158 : vector<8x512xi1>, vector<8x512xf32>
    %160 = arith.truncf %159 : vector<8x512xf32> to vector<8x512xbf16>
    %c16_106 = arith.constant 16 : index
    %c0_107 = arith.constant 0 : index
    %161 = vector.load %arg8[%c16_106, %c0_107] : memref<72x512xbf16, #tpu.memory_space<vmem>>, vector<8x512xbf16>
    tpu.vector_store %arg8[%c16_106, %c0_107], %160 {strides = array<i32>} : memref<72x512xbf16, #tpu.memory_space<vmem>>, vector<8x512xbf16>,
    %c1_i32_108 = arith.constant 1 : i32
    %162 = tpu.dynamic_rotate %146 by %c1_i32_108 dim 1 : vector<8x512xf32>, i32 -> vector<8x512xf32>
    %cst_109 = arith.constant 0.000000e+00 : f32
    %163 = vector.broadcast %cst_109 : f32 to vector<8x512xf32>
    %164 = arith.select %20, %162, %163 : vector<8x512xi1>, vector<8x512xf32>
    %165 = arith.truncf %164 : vector<8x512xf32> to vector<8x512xbf16>
    %c24_110 = arith.constant 24 : index
    %c0_111 = arith.constant 0 : index
    %166 = vector.load %arg8[%c24_110, %c0_111] : memref<72x512xbf16, #tpu.memory_space<vmem>>, vector<8x512xbf16>
    tpu.vector_store %arg8[%c24_110, %c0_111], %165 {strides = array<i32>} : memref<72x512xbf16, #tpu.memory_space<vmem>>, vector<8x512xbf16>,
    %167 = arith.truncf %146 : vector<8x512xf32> to vector<8x512xbf16>
    %c32_112 = arith.constant 32 : index
    %c0_113 = arith.constant 0 : index
    %168 = vector.load %arg8[%c32_112, %c0_113] : memref<72x512xbf16, #tpu.memory_space<vmem>>, vector<8x512xbf16>
    tpu.vector_store %arg8[%c32_112, %c0_113], %167 {strides = array<i32>} : memref<72x512xbf16, #tpu.memory_space<vmem>>, vector<8x512xbf16>,
    %c511_i32_114 = arith.constant 511 : i32
    %169 = tpu.dynamic_rotate %146 by %c511_i32_114 dim 1 : vector<8x512xf32>, i32 -> vector<8x512xf32>
    %cst_115 = arith.constant 0.000000e+00 : f32
    %170 = vector.broadcast %cst_115 : f32 to vector<8x512xf32>
    %171 = arith.select %24, %169, %170 : vector<8x512xi1>, vector<8x512xf32>
    %172 = arith.truncf %171 : vector<8x512xf32> to vector<8x512xbf16>
    %c40_116 = arith.constant 40 : index
    %c0_117 = arith.constant 0 : index
    %173 = vector.load %arg8[%c40_116, %c0_117] : memref<72x512xbf16, #tpu.memory_space<vmem>>, vector<8x512xbf16>
    tpu.vector_store %arg8[%c40_116, %c0_117], %172 {strides = array<i32>} : memref<72x512xbf16, #tpu.memory_space<vmem>>, vector<8x512xbf16>,
    %c497_i32_118 = arith.constant 497 : i32
    %174 = tpu.dynamic_rotate %146 by %c497_i32_118 dim 1 : vector<8x512xf32>, i32 -> vector<8x512xf32>
    %cst_119 = arith.constant 0.000000e+00 : f32
    %175 = vector.broadcast %cst_119 : f32 to vector<8x512xf32>
    %176 = arith.select %27, %174, %175 : vector<8x512xi1>, vector<8x512xf32>
    %177 = arith.truncf %176 : vector<8x512xf32> to vector<8x512xbf16>
    %c48_120 = arith.constant 48 : index
    %c0_121 = arith.constant 0 : index
    %178 = vector.load %arg8[%c48_120, %c0_121] : memref<72x512xbf16, #tpu.memory_space<vmem>>, vector<8x512xbf16>
    tpu.vector_store %arg8[%c48_120, %c0_121], %177 {strides = array<i32>} : memref<72x512xbf16, #tpu.memory_space<vmem>>, vector<8x512xbf16>,
    %c496_i32_122 = arith.constant 496 : i32
    %179 = tpu.dynamic_rotate %146 by %c496_i32_122 dim 1 : vector<8x512xf32>, i32 -> vector<8x512xf32>
    %cst_123 = arith.constant 0.000000e+00 : f32
    %180 = vector.broadcast %cst_123 : f32 to vector<8x512xf32>
    %181 = arith.select %22, %179, %180 : vector<8x512xi1>, vector<8x512xf32>
    %182 = arith.truncf %181 : vector<8x512xf32> to vector<8x512xbf16>
    %c56_124 = arith.constant 56 : index
    %c0_125 = arith.constant 0 : index
    %183 = vector.load %arg8[%c56_124, %c0_125] : memref<72x512xbf16, #tpu.memory_space<vmem>>, vector<8x512xbf16>
    tpu.vector_store %arg8[%c56_124, %c0_125], %182 {strides = array<i32>} : memref<72x512xbf16, #tpu.memory_space<vmem>>, vector<8x512xbf16>,
    %c495_i32_126 = arith.constant 495 : i32
    %184 = tpu.dynamic_rotate %146 by %c495_i32_126 dim 1 : vector<8x512xf32>, i32 -> vector<8x512xf32>
    %cst_127 = arith.constant 0.000000e+00 : f32
    %185 = vector.broadcast %cst_127 : f32 to vector<8x512xf32>
    %186 = arith.select %28, %184, %185 : vector<8x512xi1>, vector<8x512xf32>
    %187 = arith.truncf %186 : vector<8x512xf32> to vector<8x512xbf16>
    %c64_128 = arith.constant 64 : index
    %c0_129 = arith.constant 0 : index
    %188 = vector.load %arg8[%c64_128, %c0_129] : memref<72x512xbf16, #tpu.memory_space<vmem>>, vector<8x512xbf16>
    tpu.vector_store %arg8[%c64_128, %c0_129], %187 {strides = array<i32>} : memref<72x512xbf16, #tpu.memory_space<vmem>>, vector<8x512xbf16>,
    %c2 = arith.constant 2 : index
    %c0_130 = arith.constant 0 : index
    %c0_131 = arith.constant 0 : index
    %189 = vector.load %arg3[%c2, %c0_130, %c0_131] : memref<3x8x72xbf16, #tpu.memory_space<vmem>>, vector<1x8x72xbf16>
    %190 = vector.shape_cast %189 : vector<1x8x72xbf16> to vector<8x72xbf16>
    %c0_132 = arith.constant 0 : index
    %c0_133 = arith.constant 0 : index
    %191 = vector.load %arg8[%c0_132, %c0_133] : memref<72x512xbf16, #tpu.memory_space<vmem>>, vector<72x512xbf16>
    %cst_134 = arith.constant dense<0.000000e+00> : vector<8x512xf32>
    %192 = tpu.matmul %190, %191, %cst_134 {dimension_numbers = #tpu.dot_dimension_numbers<[1], [0], [0], [1], [0, 0, 1, 1], [], []>} : vector<8x72xbf16>, vector<72x512xbf16>, vector<8x512xf32> -> vector<8x512xf32>
    %c48_135 = arith.constant 48 : index
    %c0_136 = arith.constant 0 : index
    %193 = vector.load %arg5[%c48_135, %c0_136] : memref<88x1xf32, #tpu.memory_space<vmem>>, vector<8x1xf32>
    %194 = vector.broadcast %193 : vector<8x1xf32> to vector<8x512xf32>
    %195 = arith.addf %192, %194 : vector<8x512xf32>
    %cst_137 = arith.constant 0.000000e+00 : f32
    %196 = vector.broadcast %cst_137 : f32 to vector<8x512xf32>
    %197 = arith.maximumf %195, %196 : vector<8x512xf32>
    %198 = arith.truncf %197 : vector<8x512xf32> to vector<8x512xbf16>
    %c16_138 = arith.constant 16 : index
    %c0_139 = arith.constant 0 : index
    %199 = vector.load %arg7[%c16_138, %c0_139] : memref<32x512xbf16, #tpu.memory_space<vmem>>, vector<8x512xbf16>
    tpu.vector_store %arg7[%c16_138, %c0_139], %198 {strides = array<i32>} : memref<32x512xbf16, #tpu.memory_space<vmem>>, vector<8x512xbf16>,
    %c0_140 = arith.constant 0 : index
    %c0_141 = arith.constant 0 : index
    %200 = vector.load %arg4[%c0_140, %c0_141] : memref<32x32xbf16, #tpu.memory_space<vmem>>, vector<32x32xbf16>
    %c0_142 = arith.constant 0 : index
    %c0_143 = arith.constant 0 : index
    %201 = vector.load %arg7[%c0_142, %c0_143] : memref<32x512xbf16, #tpu.memory_space<vmem>>, vector<32x512xbf16>
    %cst_144 = arith.constant dense<0.000000e+00> : vector<32x512xf32>
    %202 = tpu.matmul %200, %201, %cst_144 {dimension_numbers = #tpu.dot_dimension_numbers<[1], [0], [0], [1], [0, 0, 1, 1], [], []>} : vector<32x32xbf16>, vector<32x512xbf16>, vector<32x512xf32> -> vector<32x512xf32>
    %c56_145 = arith.constant 56 : index
    %c0_146 = arith.constant 0 : index
    %203 = vector.load %arg5[%c56_145, %c0_146] : memref<88x1xf32, #tpu.memory_space<vmem>>, vector<32x1xf32>
    %204 = vector.broadcast %203 : vector<32x1xf32> to vector<32x512xf32>
    %205 = arith.addf %202, %204 : vector<32x512xf32>
    %c0_147 = arith.constant 0 : index
    %c0_148 = arith.constant 0 : index
    %206 = vector.load %arg1[%c0_147, %c0_148] : memref<32x512xbf16, #tpu.memory_space<vmem>>, vector<32x512xbf16>
    %207 = arith.extf %206 : vector<32x512xbf16> to vector<32x512xf32>
    %208 = arith.addf %205, %207 : vector<32x512xf32>
    %cst_149 = arith.constant 0.000000e+00 : f32
    %209 = vector.broadcast %cst_149 : f32 to vector<32x512xf32>
    %210 = arith.maximumf %208, %209 : vector<32x512xf32>
    %c0_150 = arith.constant 0 : index
    %c0_151 = arith.constant 0 : index
    %211 = vector.load %arg6[%c0_150, %c0_151] : memref<32x512xf32, #tpu.memory_space<vmem>>, vector<32x512xf32>
    tpu.vector_store %arg6[%c0_150, %c0_151], %210 {strides = array<i32>} : memref<32x512xf32, #tpu.memory_space<vmem>>, vector<32x512xf32>,
    return
  }
  func.func @transform_0(%arg0: i32) -> (i32, i32) {
    %c0_i32 = arith.constant 0 : i32
    %c0_i32_0 = arith.constant 0 : i32
    return %c0_i32, %arg0 : i32, i32
  }
  func.func @transform_1(%arg0: i32) -> (i32, i32) {
    %c0_i32 = arith.constant 0 : i32
    %c0_i32_0 = arith.constant 0 : i32
    %c0_i32_1 = arith.constant 0 : i32
    return %c0_i32, %c0_i32_0 : i32, i32
  }
  func.func @transform_2(%arg0: i32) -> (i32, i32, i32) {
    %c0_i32 = arith.constant 0 : i32
    %c0_i32_0 = arith.constant 0 : i32
    %c0_i32_1 = arith.constant 0 : i32
    %c0_i32_2 = arith.constant 0 : i32
    return %c0_i32, %c0_i32_0, %c0_i32_1 : i32, i32, i32
  }
  func.func @transform_3(%arg0: i32) -> (i32, i32) {
    %c0_i32 = arith.constant 0 : i32
    %c0_i32_0 = arith.constant 0 : i32
    %c0_i32_1 = arith.constant 0 : i32
    return %c0_i32, %c0_i32_0 : i32, i32
  }
  func.func @transform_4(%arg0: i32) -> (i32, i32) {
    %c0_i32 = arith.constant 0 : i32
    %c0_i32_0 = arith.constant 0 : i32
    %c0_i32_1 = arith.constant 0 : i32
    return %c0_i32, %c0_i32_0 : i32, i32
  }
  func.func @transform_5(%arg0: i32) -> (i32, i32) {
    %c0_i32 = arith.constant 0 : i32
    %c0_i32_0 = arith.constant 0 : i32
    return %c0_i32, %arg0 : i32, i32
  }
}

</mosaic_0001>

<bundles_post_ra>
// kernel: tpu_custom_call.1
= control target key start
LH: loop header
LB: loop body
LE: loop exit
PB: predicated region body
PF: predicated region fallthrough
CT: control target
= control target key end

     0   :  { %10 = vsyncpa [#allocation5], 0  ;;  %s3865_s0 = inlined_call_operand.vmem [shape: bf16[32,512], index: 0, kind: input, shape index: {}]   ;;  %s3866_s1 = inlined_call_operand.vmem [shape: bf16[32,32], index: 1, kind: input, shape index: {}]   ;;  %s3867_s2 = inlined_call_operand.hbm [shape: bf16[3,8,72], index: 2, kind: input, shape index: {}]   ;;  %s3868_s3 = inlined_call_operand.vmem [shape: bf16[32,32], index: 3, kind: input, shape index: {}]   ;;  %s3869_s4 = inlined_call_operand.vmem [shape: f32[88,1], index: 4, kind: input, shape index: {}]   ;;  %s3870_s5 = inlined_call_operand.hbm [shape: f32[32,512], index: 5, kind: output, shape index: {}]  }
   0x1   :  { %11 = vsyncpa [#allocation6], 0  ;;  %s2907_s18 = smov [#allocation4]   ;;  %s2859_s22 = scalar_lea.hbm %s3867_s2, 192 }
   0x2   :  { %s21_s19 = sshll.u32 %s2907_s18, 4  ;;  %p2860_p0 = scmp.ne.s32.totalorder %s3867_s2, %s2859_s22  ;;  %s22_s19 = int_to_ptr.vmem [resolvable:$true] %s21_s19 }
   0x3   :  { %p2863_p1 = scmp.lt.u32.totalorder %s2859_s22, %s3867_s2 }
   0x5   :  { %p2865_p2 = pnand %p2863_p1, %p2860_p0 }
   0x7   :  { %2868 = shalt.err (!%p2865_p2)
}
   0x8   :  { %s2869_s27 = scalar_lea.vmem %s22_s19, 192  ;;  %p2874_p4 = scmp.lt.s32.totalorder %s22_s19, %s22_s19 }
   0x9   :  { %p2870_p3 = scmp.ne.s32.totalorder %s22_s19, %s2869_s27  ;;  %p2875_p5 = scmp.lt.s32.totalorder %s2869_s27, %s2869_s27 }
   0xb   :  { %p2876_p6 = por %p2875_p5, %p2874_p4 }
   0xd   :  { %p2877_p7 = pnand %p2876_p6, %p2870_p3 }
   0xf   :  { %2880 = shalt.err (!%p2877_p7)
}
  0x10   :  { %s2908_s28 = smov 64   ;;  %s2909_s29 = smov 4  }
  0x11   :  { %27 = dma.hbm_to_vmem [thread:$0]  %s3867_s2, 192, %s22_s19, [#allocation5], %s2908_s28, %s2908_s28, %s2909_s29  }
  0x12   :  { %2903 = dma.done.wait [#allocation5], 192  }
  0x13   :  { %2904 = vsyncadd [#allocation5], 4294967104  ;;  %v2910_v0 = vmov 0   ;;  %v2843_v1 = vld [vmem:[%s3865_s0 + $0x4] ss:$16 sps:$4 sm:$0xff]   ;;  %vm3871_vm0 = vcmask 261120   ;;  %v267_v54 = vlaneseq }
  0x14   :  { %161 = vmatprep.mubr.bf16.mxu0 %v2910_v0  ;;  %214 = vmatprep.mubr.bf16.mxu1 %v2910_v0  ;;  %v2845_v2 = vld [vmem:[%s3865_s0 + $0xc] ss:$16 sps:$4 sm:$0xff]   ;;  %v2847_v3 = vld [vmem:[%s3865_s0] ss:$16 sps:$4 sm:$0xff]   ;;  %v2848_v4 = vld [vmem:[%s3865_s0 + $0x8] ss:$16 sps:$4 sm:$0xff]  }
  0x15   :  { %2601 = vset.pattern.permute.xlu0 %v2910_v0  ;;  %2762 = vset.pattern.permute.xlu1 %v2910_v0  ;;  %v2849_v5 = vld [vmem:[%s3865_s0 + $0x24] ss:$16 sps:$4 sm:$0xff]   ;;  %v2851_v6 = vld [vmem:[%s3865_s0 + $0x2c] ss:$16 sps:$4 sm:$0xff]   ;;  %v2853_v7 = vld [vmem:[%s3865_s0 + $0x20] ss:$16 sps:$4 sm:$0xff]  }
  0x16   :  { %129 = vmatprep.subr.bf16.mxu0 %v2843_v1  ;;  %182 = vmatprep.subr.bf16.mxu1 %v2845_v2  ;;  %v2854_v8 = vld [vmem:[%s3865_s0 + $0x28] ss:$16 sps:$4 sm:$0xff]   ;;  %v2855_v9 = vld [vmem:[%s3866_s1] sm:$0xff]   ;;  %s2911_s28 = smov 16   ;;  %s2912_s29 = smov 17   ;;  %v3044_v55 = vand.u32 127, %v267_v54 }
  0x17   :  { %130 = vmatpush1.bf16.msra.mxu0 %v2847_v3  ;;  %183 = vmatpush1.bf16.msra.mxu1 %v2848_v4  ;;  %v48_v10 = vld [vmem:[%s3869_s4] sm:$0xff]  ;;  %v49_v11 = vld [vmem:[%s3869_s4 + $0x8] sm:$0xff]  ;;  %s2913_s30 = smov 15   ;;  %s2914_s6 = smov 1  }
  0x18   :  { %131 = vmatprep.subr.bf16.mxu0 %v2849_v5  ;;  %184 = vmatprep.subr.bf16.mxu1 %v2851_v6  ;;  %s2915_s7 = smov 127   ;;  %s2916_s8 = smov 113   ;;  %v2856_v52 = vld [vmem:[%s3866_s1 + $0x8] sm:$0xff]   ;;  %v637_v53 = vld [vmem:[%s3869_s4 + $0x20] sm:$0xff]  ;;  %v269_v56 = vadd.s32 128, %v3044_v55  ;;  %v3048_v58 = vadd.s32 384, %v3044_v55 }
  0x19   :  { %54 = vperm.xlu0 %2601, %v48_v10   ;;  %s2917_s2 = smov 112   ;;  %s2918_s11 = smov 111   ;;  %v276_v61 = vshra.s32 %v3044_v55, 4  ;;  %v3054_v62 = vadd.s32 256, %v3044_v55  ;;  %v272_v3 = vand.u32 15, %v3044_v55  ;;  %vm3872_vm3 = vcmp.lt.s32.totalorder %v3044_v55, 16 }
  0x1a   :  { %v277_v57 = vshra.s32 %v269_v56, 4  ;;  %v273_v59 = vand.u32 15, %v269_v56  ;;  %v279_v63 = vshra.s32 %v3048_v58, 4  ;;  %vm3876_vm4 = vcmp.lt.s32.totalorder %v3044_v55, 17 }
  0x1b   :  { %132 = vmatpush1.bf16.msra.mxu0 %v2853_v7  ;;  %185 = vmatpush1.bf16.msra.mxu1 %v2854_v8  ;;  %v3062_v2 = vand.u32 15, %v276_v61  ;;  %v278_v4 = vshra.s32 %v3054_v62, 4  ;;  %v275_v7 = vand.u32 15, %v3048_v58  ;;  %vm3089_vm8 = vcmp.ne.s32.totalorder %v272_v3, 0 }
  0x1c   :  { %v3050_v60 = vand.u32 15, %v277_v57  ;;  %vm3058_vm2 = vcmp.ne.s32.totalorder %v273_v59, 0  ;;  %v3073_v8 = vand.u32 15, %v279_v63  ;;  %vm3097_vm9 = vcmp.ne.s32.totalorder %v273_v59, 15 }
  0x1d   :  { %59 = vperm.xlu0 %2601, %v49_v11   ;;  %vm3873_vm6 = vcmp.ne.s32.totalorder %v3062_v2, 0  ;;  %vm3102_vm11 = vcmp.ne.s32.totalorder %v275_v7, 0  ;;  %vm3874_vm13 = vcmp.lt.s32.totalorder %v3044_v55, 15  ;;  %v3937_v58 = vmov 0 }
  0x1e   :  { %2207 = vmatmul.mubr.msk.bf16.vlgmr.msra.gmra.mrb[0].mxu0 %vm3871_vm0, %v2855_v9  ;;  %2209 = vmatmul.mubr.msk.bf16.vlgmr.msra.gmra.mrb[0].mxu1 %vm3871_vm0, %v2855_v9  ;;  %vm285_vm1 = vcmp.ne.s32.totalorder %v3050_v60, 0  ;;  %vm3875_vm10 = vcmp.ne.s32.totalorder %v3073_v8, 0  ;;  %vm300_vm12 = vmand %vm3873_vm6, %vm3089_vm8  ;;  %v3939_v59 = vmov 0  ;;  %v3941_v61 = vmov 0 }
  0x1f   :  { %171 = vmatprep.mubr.bf16.mxu0 %v2910_v0  ;;  %224 = vmatprep.mubr.bf16.mxu1 %v2910_v0  ;;  %vm301_vm5 = vmand %vm285_vm1, %vm3058_vm2 }
  0x20   :  { %vm3083_vm7 = vmpackc.low %vm285_vm1, %vm301_vm5 }
  0x21   :  { %vm3119_vm14 = vmand %vm285_vm1, %vm3097_vm9 }
  0x22   :  { %vm3139_vm1 = vmpackc.low %vm3873_vm6, %vm300_vm12  ;;  %vm3931_vm6 = vcmp.lt.s32.totalorder %v3044_v55, 16 }
  0x26   :  { %2208 = vmatmul.mubr.msk.bf16.gmra.mrb[4].mxu0 %vm3871_vm0, %v2856_v52  ;;  %2210 = vmatmul.mubr.msk.bf16.gmra.mrb[4].mxu1 %vm3871_vm0, %v2856_v52  ;;  %vm3879_vm0 = vcmp.lt.s32.totalorder %v3044_v55, 1 }
  0x27   :  { %782 = vmatprep.mubr.bf16.mxu0 %v2910_v0  ;;  %823 = vmatprep.mubr.bf16.mxu1 %v2910_v0 }
  0x98   :  { %v55_v12 = vpop.permute.xlu0 %54 }
  0x9c   :  { %v60_v13 = vpop.permute.xlu0 %59 }
  0xf1   :  { %v163_v14 = vpop.f32.mrb[0].mxu0  ;;  %v216_v15 = vpop.f32.mrb[0].mxu1 }
  0xf2   :  { %v164_v16 = vadd.f32 %v163_v14, %v55_v12  ;;  %v217_v17 = vadd.f32 %v216_v15, %v55_v12  ;;  %v165_v18 = vpop.f32.mrb[1].mxu0  ;;  %v218_v19 = vpop.f32.mrb[1].mxu1 }
  0xf3   :  { %v166_v20 = vadd.f32 %v165_v18, %v55_v12  ;;  %v219_v21 = vadd.f32 %v218_v19, %v55_v12  ;;  %v167_v22 = vpop.f32.mrb[2].mxu0  ;;  %v220_v23 = vpop.f32.mrb[2].mxu1  ;;  %v3093_v18 = vand.u32 15, %v278_v4  ;;  %v3943_v4 = vmov 0 }
  0xf4   :  { %v168_v24 = vadd.f32 %v167_v22, %v60_v13  ;;  %v221_v25 = vadd.f32 %v220_v23, %v60_v13  ;;  %v169_v26 = vpop.f32.mrb[3].mxu0  ;;  %v222_v27 = vpop.f32.mrb[3].mxu1  ;;  %v235_v30 = vmax.f32 %v164_v16, 0.0  ;;  %v237_v31 = vmax.f32 %v217_v17, 0.0 }
  0xf5   :  { %v170_v28 = vadd.f32 %v169_v26, %v60_v13  ;;  %v223_v29 = vadd.f32 %v222_v27, %v60_v13  ;;  %v236_v34 = vmax.f32 %v166_v20, 0.0  ;;  %v238_v35 = vmax.f32 %v219_v21, 0.0 }
  0xf6   :  { %v239_v32 = vmax.f32 %v168_v24, 0.0  ;;  %v241_v33 = vmax.f32 %v221_v25, 0.0  ;;  %v274_v13 = vand.u32 15, %v3054_v62  ;;  %v3915_v16 = vmov 0 }
  0xf7   :  { %v240_v36 = vmax.f32 %v170_v28, 0.0  ;;  %v242_v37 = vmax.f32 %v223_v29, 0.0  ;;  %v3916_v16 = vsel %vm3083_vm7, 4294967295, %v3915_v16  ;;  %v3919_v22 = vmov 0 }
  0xf8   :  { %v251_v38 = vpack.c.bf16 %v239_v32, %v235_v30  ;;  %v253_v39 = vpack.c.bf16 %v241_v33, %v237_v31  ;;  %v3920_v22 = vsel %vm3097_vm9, 4294967295, %v3919_v22  ;;  %vm3880_vm15 = vcmp.ne.s32.totalorder %v3093_v18, 0 }
  0xf9   :  { %v252_v40 = vpack.c.bf16 %v240_v36, %v236_v34  ;;  %v254_v41 = vpack.c.bf16 %v242_v37, %v238_v35  ;;  %vm3124_vm5 = vcmp.ne.s32.totalorder %v274_v13, 0  ;;  %v3929_v37 = vmov 0 }
  0xfa   :  { %259 = vst [vmem:[#allocation2] sm:$0xff] %v251_v38  ;;  %261 = vst [vmem:[#allocation2 + $0x10] sm:$0xff] %v253_v39  ;;  %v3930_v37 = vsel %vm3139_vm1, 4294967295, %v3929_v37 }
  0xfb   :  { %260 = vst [vmem:[#allocation2 + $0x8] sm:$0xff] %v252_v40  ;;  %262 = vst [vmem:[#allocation2 + $0x18] sm:$0xff] %v254_v41 }
  0xfc   :  { %vm302_vm12 = vmand %vm3880_vm15, %vm3124_vm5 }
 0x101   :  { %v3006_v42 = vld [vmem:[#allocation2] sm:$0xf]  ;;  %v3008_v43 = vld [vmem:[#allocation2 + $0x10] sm:$0xf] }
 0x102   :  { %v3010_v44 = vld [vmem:[#allocation2 + $0x8] sm:$0xf]  ;;  %v320_v45 = vunpack.c.l.bf16 %v3006_v42  ;;  %v3013_v46 = vld [vmem:[#allocation2 + $0x18] sm:$0xf]  ;;  %v322_v49 = vunpack.c.l.bf16 %v3008_v43 }
 0x103   :  { %v321_v47 = vunpack.c.l.bf16 %v3010_v44  ;;  %v323_v50 = vunpack.c.l.bf16 %v3013_v46 }
 0x105   :  { %v2612_v48 = vpack.i.bf16 %v321_v47, %v320_v45  ;;  %v2607_v51 = vpack.i.bf16 %v323_v50, %v322_v49  ;;  %v3935_v50 = vmov 0 }
 0x107   :  { %2613 = vrot.lane.b32.xlu0 %v2612_v48, %s2911_s28  ;;  %2603 = vrot.lane.b32.xlu1 %v2612_v48, %s2912_s29 }
 0x10b   :  { %2623 = vrot.lane.b32.xlu0 %v2612_v48, %s2913_s30  ;;  %2608 = vrot.lane.b32.xlu1 %v2607_v51, %s2912_s29 }
 0x10f   :  { %2633 = vrot.lane.b32.xlu0 %v2612_v48, %s2914_s6  ;;  %2618 = vrot.lane.b32.xlu1 %v2607_v51, %s2911_s28 }
 0x113   :  { %2643 = vrot.lane.b32.xlu0 %v2612_v48, %s2915_s7  ;;  %2628 = vrot.lane.b32.xlu1 %v2607_v51, %s2913_s30 }
 0x117   :  { %2653 = vrot.lane.b32.xlu0 %v2612_v48, %s2916_s8  ;;  %2638 = vrot.lane.b32.xlu1 %v2607_v51, %s2914_s6 }
 0x11b   :  { %2663 = vrot.lane.b32.xlu0 %v2612_v48, %s2917_s2  ;;  %2648 = vrot.lane.b32.xlu1 %v2607_v51, %s2915_s7 }
 0x11f   :  { %2673 = vrot.lane.b32.xlu0 %v2612_v48, %s2918_s11  ;;  %2658 = vrot.lane.b32.xlu1 %v2607_v51, %s2916_s8 }
 0x123   :  { %640 = vperm.xlu0 %2601, %v637_v53   ;;  %2668 = vrot.lane.b32.xlu1 %v2607_v51, %s2917_s2 }
 0x127   :  { %2678 = vrot.lane.b32.xlu1 %v2607_v51, %s2918_s11 }
 0x179   :  { %v2614_v5 = vpop.permute.xlu0 %2613  ;;  %v2604_v6 = vpop.permute.xlu1 %2603 }
 0x17a   :  { %v2616_v9 = vunpack.i.h.bf16 %v2614_v5  ;;  %v2615_v10 = vunpack.i.l.bf16 %v2614_v5  ;;  %v2606_v11 = vunpack.i.h.bf16 %v2604_v6  ;;  %v2605_v12 = vunpack.i.l.bf16 %v2604_v6 }
 0x17b   :  { %v3945_v5 = vmov 0 }
 0x17c   :  { %v370_v14 = vsel %vm3872_vm3, %v2615_v10, %v2616_v9  ;;  %v335_v15 = vsel %vm3876_vm4, %v2605_v12, %v2606_v11  ;;  %vm3133_vm3 = vmand %vm3875_vm10, %vm3102_vm11 }
 0x17d   :  { %v2414_v19 = vpack.c.bf16 %v370_v14, %v335_v15  ;;  %v3095_v20 = vpop.permute.xlu0 %2623  ;;  %v2609_v21 = vpop.permute.xlu1 %2608  ;;  %vm3933_vm10 = vmmov %vm3931_vm6 }
 0x17e   :  { %v2626_v24 = vunpack.i.h.bf16 %v3095_v20  ;;  %v2625_v25 = vunpack.i.l.bf16 %v3095_v20  ;;  %v2611_v26 = vunpack.i.h.bf16 %v2609_v21  ;;  %v2610_v27 = vunpack.i.l.bf16 %v2609_v21 }
 0x17f   :  { %2415 = vmatprep.subr.msk.bf16.mxu0 %vm3083_vm7, %v2414_v19  ;;  %v3956_v19 = vmov 0 }
 0x180   :  { %v405_v38 = vsel %vm3874_vm13, %v2625_v25, %v2626_v24  ;;  %v333_v39 = vsel %vm3876_vm4, %v2610_v27, %v2611_v26  ;;  %v334_v40 = vsel %vm3876_vm4, %v2606_v11, %v2610_v27  ;;  %v336_v41 = vsel %vm3876_vm4, %v2611_v26, %v2605_v12  ;;  %vm3932_vm13 = vmmov %vm3931_vm6 }
 0x181   :  { %v2634_v30 = vpop.permute.xlu0 %2633  ;;  %v2619_v31 = vpop.permute.xlu1 %2618  ;;  %vm3934_vm4 = vcmp.ne.s32.totalorder %v3073_v8, 0  ;;  %v3962_v27 = vmov 0 }
 0x182   :  { %v2636_v33 = vunpack.i.h.bf16 %v2634_v30  ;;  %v2635_v34 = vunpack.i.l.bf16 %v2634_v30  ;;  %v2621_v35 = vunpack.i.h.bf16 %v2619_v31  ;;  %v2620_v36 = vunpack.i.l.bf16 %v2619_v31  ;;  %vm3167_vm7 = vmpackc.low %vm3934_vm4, %vm3133_vm3 }
 0x183   :  { %v3936_v50 = vsel %vm3167_vm7, 4294967295, %v3935_v50  ;;  %vm3181_vm3 = vmpackc.low %vm3880_vm15, %vm302_vm12  ;;  %vm3185_vm4 = vcmp.ne.s32.totalorder %v275_v7, 15 }
 0x184   :  { %v440_v45 = vsel %vm3879_vm0, %v2635_v34, %v2636_v33  ;;  %v371_v47 = vsel %vm3931_vm6, %v2621_v35, %v2615_v10  ;;  %v368_v48 = vsel %vm3932_vm13, %v2620_v36, %v2621_v35  ;;  %v369_v49 = vsel %vm3933_vm10, %v2616_v9, %v2620_v36  ;;  %vm3175_vm6 = vmpackc.low %vm3058_vm2, %vm3119_vm14 }
 0x185   :  { %v2420_v51 = vpack.c.bf16 %v440_v45, %v405_v38  ;;  %v2417_v52 = vpack.c.bf16 %v371_v47, %v336_v41  ;;  %v2432_v53 = vpack.c.bf16 %v368_v48, %v333_v39  ;;  %v2435_v54 = vpack.c.bf16 %v369_v49, %v334_v40  ;;  %v2644_v56 = vpop.permute.xlu0 %2643  ;;  %v2629_v57 = vpop.permute.xlu1 %2628 }
 0x186   :  { %v3938_v58 = vsel %vm3175_vm6, 4294967295, %v3937_v58  ;;  %v3940_v59 = vsel %vm3181_vm3, 4294967295, %v3939_v59  ;;  %v3942_v61 = vsel %vm3185_vm4, 4294967295, %v3941_v61  ;;  %v2631_v62 = vunpack.i.h.bf16 %v2629_v57 }
 0x187   :  { %v2630_v63 = vunpack.i.l.bf16 %v2629_v57  ;;  %2418 = vmatpush1.bf16.msk.msra.mxu0 %vm3139_vm1, %v2417_v52  ;;  %2433 = vmatprep.subr.msk.bf16.mxu1 %vm3167_vm7, %v2432_v53  ;;  %vm3195_vm10 = vcmp.ne.s32.totalorder %v272_v3, 15  ;;  %vm3199_vm13 = vcmp.ne.s32.totalorder %v274_v13, 15  ;;  %vm3947_vm14 = vcmp.ne.s32.totalorder %v3062_v2, 0 }
 0x188   :  { %v3944_v4 = vsel %vm3195_vm10, 4294967295, %v3943_v4  ;;  %v3946_v5 = vsel %vm3199_vm13, 4294967295, %v3945_v5  ;;  %2421 = vmatprep.subr.msk.bf16.mxu0 %vm3175_vm6, %v2420_v51  ;;  %vm304_vm12 = vmand %vm3947_vm14, %vm3195_vm10  ;;  %2436 = vmatpush1.bf16.msk.msra.mxu1 %vm3181_vm3, %v2435_v54  ;;  %vm3948_vm0 = vcmp.ne.s32.totalorder %v3073_v8, 0  ;;  %v2646_v9 = vunpack.i.h.bf16 %v2644_v56 }
 0x189   :  { %v3211_v6 = vpop.permute.xlu0 %2653  ;;  %v2639_v3 = vpop.permute.xlu1 %2638  ;;  %vm3217_vm15 = vmand %vm3948_vm0, %vm3185_vm4  ;;  %v2645_v10 = vunpack.i.l.bf16 %v2644_v56  ;;  %vm3951_vm14 = vcmp.ne.s32.totalorder %v3093_v18, 0  ;;  %vm3954_vm1 = vcmp.lt.s32.totalorder %v3044_v55, 15  ;;  %vm293_vm4 = vcmp.ne.s32.totalorder %v3050_v60, 15 }
 0x18a   :  { %v2641_v11 = vunpack.i.h.bf16 %v2639_v3  ;;  %v2640_v12 = vunpack.i.l.bf16 %v2639_v3  ;;  %vm3225_vm6 = vmand %vm3951_vm14, %vm3199_vm13  ;;  %v406_v14 = vsel %vm3954_vm1, %v2631_v62, %v2625_v25  ;;  %vm3959_vm13 = vcmp.lt.s32.totalorder %v3044_v55, 1 }
 0x18b   :  { %vm3955_vm0 = vmmov %vm3954_vm1  ;;  %v2656_v23 = vunpack.i.h.bf16 %v3211_v6 }
 0x18c   :  { %v403_v15 = vsel %vm3955_vm0, %v2630_v63, %v2631_v62  ;;  %vm3236_vm7 = vmpackc.low %vm3089_vm8, %vm304_vm12  ;;  %v441_v21 = vsel %vm3959_vm13, %v2641_v11, %v2635_v34  ;;  %v2219_v34 = vcombine.low %v3006_v42, %v3010_v44  ;;  %v2220_v44 = vcombine.low %v3008_v43, %v3013_v46 }
 0x18d   :  { %v3957_v19 = vsel %vm3236_vm7, 4294967295, %v3956_v19  ;;  %vm3958_vm14 = vmmov %vm3955_vm0  ;;  %v2423_v28 = vpack.c.bf16 %v441_v21, %v406_v14  ;;  %v3257_v31 = vpop.permute.xlu0 %2663  ;;  %v2649_v32 = vpop.permute.xlu1 %2648 }
 0x18e   :  { %v404_v20 = vsel %vm3958_vm14, %v2626_v24, %v2630_v63  ;;  %vm3960_vm3 = vmmov %vm3959_vm13  ;;  %v2651_v36 = vunpack.i.h.bf16 %v2649_v32  ;;  %v2650_v38 = vunpack.i.l.bf16 %v2649_v32  ;;  %vm3895_vm14 = vcmp.ne.s32.totalorder %v3073_v8, 15 }
 0x18f   :  { %v438_v25 = vsel %vm3960_vm3, %v2640_v12, %v2641_v11  ;;  %vm3961_vm1 = vmmov %vm3960_vm3  ;;  %2424 = vmatpush1.bf16.msk.msra.mxu0 %vm3236_vm7, %v2423_v28  ;;  %v2666_v53 = vunpack.i.h.bf16 %v3257_v31  ;;  %v2665_v54 = vunpack.i.l.bf16 %v3257_v31  ;;  %v2655_v11 = vunpack.i.l.bf16 %v3211_v6 }
 0x190   :  { %v439_v26 = vsel %vm3961_vm1, %v2636_v33, %v2640_v12  ;;  %vm3253_vm12 = vmpackc.low %vm3102_vm11, %vm3217_vm15  ;;  %v2438_v30 = vpack.c.bf16 %v438_v25, %v403_v15  ;;  %v3964_v33 = vmov 0  ;;  %vm3966_vm15 = vcmp.lt.s32.totalorder %v3044_v55, 127 }
 0x191   :  { %v3963_v27 = vsel %vm3253_vm12, 4294967295, %v3962_v27  ;;  %v2441_v24 = vpack.c.bf16 %v439_v26, %v404_v20  ;;  %vm3263_vm3 = vmpackc.low %vm3124_vm5, %vm3225_vm6  ;;  %v489_v35 = vsel %vm3966_vm15, %v2645_v10, %v2646_v9  ;;  %vm3899_vm1 = vcmp.ne.s32.totalorder %v3062_v2, 15  ;;  %v3298_v45 = vpop.permute.xlu0 %2673  ;;  %v2659_v46 = vpop.permute.xlu1 %2658 }
 0x192   :  { %v3965_v33 = vsel %vm3263_vm3, 4294967295, %v3964_v33  ;;  %vm3276_vm0 = vmand %vm293_vm4, %vm3058_vm2  ;;  %2439 = vmatprep.subr.msk.bf16.mxu1 %vm3253_vm12, %v2438_v30  ;;  %v491_v47 = vsel %vm3195_vm10, %v489_v35, 0.0  ;;  %v2676_v56 = vunpack.i.h.bf16 %v3298_v45  ;;  %v2675_v57 = vunpack.i.l.bf16 %v3298_v45 }
 0x193   :  { %vm3969_vm2 = vmmov %vm3966_vm15  ;;  %2442 = vmatpush1.bf16.msk.msra.mxu1 %vm3263_vm3, %v2441_v24  ;;  %v2661_v3 = vunpack.i.h.bf16 %v2659_v46  ;;  %v2660_v7 = vunpack.i.l.bf16 %v2659_v46  ;;  %v3985_v6 = vmov 0  ;;  %v4005_v46 = vmov 0 }
 0x194   :  { %v490_v1 = vsel %vm3969_vm2, %v2651_v36, %v2645_v10  ;;  %vm3970_vm15 = vmmov %vm3969_vm2 }
 0x195   :  { %v487_v40 = vsel %vm3970_vm15, %v2650_v38, %v2651_v36  ;;  %vm3971_vm13 = vmmov %vm3969_vm2  ;;  %vm3972_vm2 = vnez %v3946_v5  ;;  %vm3973_vm15 = vnez %v3942_v61  ;;  %v2669_v14 = vpop.permute.xlu1 %2668 }
 0x196   :  { %v488_v41 = vsel %vm3971_vm13, %v2646_v9, %v2650_v38  ;;  %v493_v49 = vsel %vm3972_vm2, %v487_v40, 0.0  ;;  %v494_v51 = vsel %vm3973_vm15, %v490_v1, 0.0  ;;  %vm3312_vm13 = vmpackc.low %vm293_vm4, %vm3276_vm0  ;;  %v2671_v26 = vunpack.i.h.bf16 %v2669_v14 }
 0x197   :  { %v492_v48 = vsel %vm3097_vm9, %v488_v41, 0.0  ;;  %vm3324_vm6 = vmand %vm293_vm4, %vm3097_vm9  ;;  %v2352_v10 = vpack.c.bf16 %v494_v51, %v493_v49  ;;  %v2670_v28 = vunpack.i.l.bf16 %v2669_v14 }
 0x198   :  { %vm3332_vm0 = vmand %vm3895_vm14, %vm3102_vm11  ;;  %v2351_v9 = vpack.c.bf16 %v492_v48, %v491_v47  ;;  %vm3982_vm11 = vcmp.lt.s32.totalorder %v3044_v55, 111 }
 0x199   :  { %vm3340_vm4 = vmand %vm3895_vm14, %vm3973_vm15  ;;  %v594_v12 = vsel %vm3982_vm11, %v2675_v57, %v2676_v56  ;;  %v2240_v20 = vcombine.high %v2220_v44, %v2352_v10  ;;  %v2404_v25 = vcombine.low %v3008_v43, %v2352_v10  ;;  %vm3987_vm14 = vcmp.lt.s32.totalorder %v3044_v55, 112  ;;  %v2679_v1 = vpop.permute.xlu1 %2678  ;;  %v3453_v10 = vpop.f32.mrb[4].mxu0 }
 0x19a   :  { %vm3352_vm3 = vmand %vm3899_vm1, %vm3089_vm8  ;;  %v2238_v15 = vcombine.high %v2219_v34, %v2351_v9  ;;  %v2403_v21 = vcombine.low %v3006_v42, %v2351_v9  ;;  %vm3901_vm8 = vcmp.lt.s32.totalorder %v3044_v55, 113  ;;  %v559_v17 = vsel %vm3987_vm14, %v2665_v54, %v2666_v53  ;;  %v618_v9 = vld [vmem:[#allocation4] sm:$0xf] }
 0x19b   :  { %vm3362_vm11 = vmand %vm3899_vm1, %vm3195_vm10  ;;  %vm3988_vm15 = vcmp.ne.s32.totalorder %v3093_v18, 15  ;;  %v525_v43 = vsel %vm3901_vm8, %v2661_v3, %v2655_v11  ;;  %v522_v30 = vsel %vm3901_vm8, %v2660_v7, %v2661_v3  ;;  %v523_v24 = vsel %vm3901_vm8, %v2656_v23, %v2660_v7  ;;  %795 = vmatprep.subr.bf16.mxu1 %v2240_v20 }
 0x19c   :  { %v3986_v6 = vsel %vm3362_vm11, 4294967295, %v3985_v6  ;;  %vm3373_vm7 = vmand %vm3988_vm15, %vm3124_vm5  ;;  %754 = vmatprep.subr.bf16.mxu0 %v2238_v15  ;;  %vm3991_vm14 = vcmp.ne.s32.totalorder %v3073_v8, 15  ;;  %vm3994_vm5 = vcmp.lt.s32.totalorder %v3044_v55, 112  ;;  %796 = vmatpush1.bf16.msra.mxu1 %v2404_v25  ;;  %vm3997_vm8 = vcmp.ne.s32.totalorder %v3062_v2, 15 }
 0x19d   :  { %vm3387_vm1 = vmpackc.low %vm3991_vm14, %vm3332_vm0  ;;  %v560_v31 = vsel %vm3994_vm5, %v2671_v26, %v2665_v54  ;;  %755 = vmatpush1.bf16.msra.mxu0 %v2403_v21  ;;  %v596_v35 = vsel %vm3362_vm11, %v594_v12, 0.0  ;;  %vm4000_vm0 = vcmp.lt.s32.totalorder %v3044_v55, 113  ;;  %v2681_v41 = vunpack.i.h.bf16 %v2679_v1 }
 0x19e   :  { %vm3995_vm15 = vmmov %vm3994_vm5  ;;  %v524_v36 = vsel %vm4000_vm0, %v2655_v11, %v2656_v23  ;;  %v2444_v39 = vpack.c.bf16 %v560_v31, %v525_v43  ;;  %v2680_v45 = vunpack.i.l.bf16 %v2679_v1  ;;  %v2409_v47 = vpack.c.bf16 %v596_v35, %v596_v35  ;;  %v3455_v23 = vpop.f32.mrb[4].mxu1  ;;  %v3457_v11 = vpop.f32.mrb[5].mxu0 }
 0x19f   :  { %v557_v32 = vsel %vm3995_vm15, %v2670_v28, %v2671_v26  ;;  %vm3996_vm10 = vmmov %vm3994_vm5  ;;  %v2429_v40 = vpack.c.bf16 %v559_v17, %v524_v36  ;;  %vm3904_vm0 = vcmask 1043456   ;;  %v3459_v12 = vpop.f32.mrb[5].mxu1  ;;  %v3461_v13 = vpop.f32.mrb[6].mxu0 }
 0x1a0   :  { %v558_v34 = vsel %vm3996_vm10, %v2666_v53, %v2670_v28  ;;  %vm3401_vm9 = vmpackc.low %vm3997_vm8, %vm3352_vm3  ;;  %v2447_v44 = vpack.c.bf16 %v557_v32, %v522_v30  ;;  %vm4001_vm10 = vcmp.ne.s32.totalorder %v3093_v18, 15  ;;  %2445 = vmatprep.subr.msk.bf16.mxu1 %vm3387_vm1, %v2444_v39  ;;  %v3463_v14 = vpop.f32.mrb[6].mxu1  ;;  %v3465_v15 = vpop.f32.mrb[7].mxu0 }
 0x1a1   :  { %v2426_v38 = vpack.c.bf16 %v558_v34, %v523_v24  ;;  %vm3413_vm14 = vmpackc.low %vm4001_vm10, %vm3373_vm7  ;;  %vm4007_vm7 = vcmp.lt.s32.totalorder %v3044_v55, 111  ;;  %v3467_v20 = vpop.f32.mrb[7].mxu1 }
 0x1a2   :  { %vm4004_vm3 = vmmov %vm4001_vm10  ;;  %v595_v48 = vsel %vm4007_vm7, %v2681_v41, %v2675_v57  ;;  %2448 = vmatpush1.bf16.msk.msra.mxu1 %vm3413_vm14, %v2447_v44  ;;  %vm3903_vm10 = vcmask 588800   ;;  %v641_v21 = vpop.permute.xlu0 %640 }
 0x1a3   :  { %vm3421_vm8 = vmand %vm4004_vm3, %vm3972_vm2  ;;  %2427 = vmatprep.subr.msk.bf16.mxu0 %vm3312_vm13, %v2426_v38  ;;  %v599_v53 = vsel %vm3340_vm4, %v595_v48, 0.0  ;;  %v846_v48 = vld [vmem:[#allocation2 + $0x10] sm:$0xf0]  ;;  %vm4010_vm3 = vcmp.lt.s32.totalorder %v3044_v55, 17 }
 0x1a4   :  { %v4006_v46 = vsel %vm3421_vm8, 4294967295, %v4005_v46  ;;  %vm4008_vm5 = vmmov %vm4007_vm7  ;;  %2430 = vmatpush1.bf16.msk.msra.mxu0 %vm3401_vm9, %v2429_v40  ;;  %v2412_v63 = vpack.c.bf16 %v599_v53, %v599_v53  ;;  %v854_v53 = vrot.slane %v846_v48, 4 }
 0x1a5   :  { %v592_v49 = vsel %vm4008_vm5, %v2680_v45, %v2681_v41  ;;  %vm4009_vm15 = vmmov %vm4008_vm5 }
 0x1a6   :  { %v593_v18 = vsel %vm4009_vm15, %v2676_v56, %v2680_v45  ;;  %v598_v54 = vsel %vm3421_vm8, %v592_v49, 0.0  ;;  %2251 = vmatprep.subr.msk.bf16.mxu1 %vm3904_vm0, %v2412_v63  ;;  %v739_v56 = vsel %vm3904_vm0, %v2409_v47, 0  ;;  %v844_v47 = vld [vmem:[#allocation2] sm:$0xf0]  ;;  %v845_v49 = vld [vmem:[#allocation2 + $0x8] sm:$0xf0]  ;;  %vm4011_vm7 = vmmov %vm4010_vm3 }
 0x1a7   :  { %v597_v51 = vsel %vm3324_vm6, %v593_v18, 0.0  ;;  %v2411_v3 = vpack.c.bf16 %v598_v54, %v598_v54  ;;  %v847_v18 = vld [vmem:[#allocation2 + $0x18] sm:$0xf0]  ;;  %v853_v54 = vrot.slane %v845_v49, 4  ;;  %vm4012_vm5 = vmmov %vm4010_vm3 }
 0x1a8   :  { %v2410_v57 = vpack.c.bf16 %v597_v51, %v597_v51  ;;  %v852_v51 = vrot.slane %v844_v47, 4  ;;  %vm4013_vm15 = vmmov %vm4010_vm3 }
 0x1a9   :  { %v745_v7 = vsel %vm3904_vm0, %v2411_v3, 0 }
 0x1aa   :  { %2249 = vmatprep.subr.msk.bf16.mxu0 %vm3904_vm0, %v2410_v57  ;;  %800 = vmatpush1.bf16.msra.mxu1 %v745_v7  ;;  %v855_v57 = vrot.slane %v847_v18, 4  ;;  %v862_v7 = vunpack.c.l.bf16 %v854_v53 }
 0x1ab   :  { %759 = vmatpush1.bf16.msra.mxu0 %v739_v56  ;;  %v860_v56 = vunpack.c.l.bf16 %v852_v51 }
 0x1ad   :  { %2252 = vmatmul.mubr.msk.bf16.vlgmr.msra.gmra.mrb[8].mxu1 %vm3903_vm10, %v618_v9 }
 0x1ae   :  { %2250 = vmatmul.mubr.msk.bf16.vlgmr.msra.gmra.mrb[8].mxu0 %vm3903_vm10, %v618_v9  ;;  %1370 = vmatprep.mubr.bf16.mxu1 %v2910_v0  ;;  %vm4014_vm10 = vcmp.lt.s32.totalorder %v3044_v55, 16 }
 0x1af   :  { %1329 = vmatprep.mubr.bf16.mxu0 %v2910_v0  ;;  %vm4015_vm0 = vmmov %vm4014_vm10 }
 0x1b0   :  { %vm4016_vm8 = vmmov %vm4015_vm0 }
 0x280   :  { %v825_v17 = vpop.f32.mrb[8].mxu1 }
 0x281   :  { %v784_v25 = vpop.f32.mrb[8].mxu0  ;;  %v826_v28 = vadd.f32 %v825_v17, %v641_v21  ;;  %v827_v43 = vpop.f32.mrb[9].mxu1 }
 0x282   :  { %v785_v26 = vadd.f32 %v784_v25, %v641_v21  ;;  %v786_v42 = vpop.f32.mrb[9].mxu0  ;;  %v828_v24 = vadd.f32 %v827_v43, %v641_v21  ;;  %v829_v32 = vpop.f32.mrb[10].mxu1 }
 0x283   :  { %v787_v30 = vadd.f32 %v786_v42, %v641_v21  ;;  %v788_v31 = vpop.f32.mrb[10].mxu0  ;;  %v834_v35 = vmax.f32 %v826_v28, 0.0  ;;  %v830_v38 = vpop.f32.mrb[11].mxu1  ;;  %v863_v28 = vunpack.c.l.bf16 %v855_v57 }
 0x284   :  { %v832_v34 = vmax.f32 %v785_v26, 0.0  ;;  %v789_v36 = vpop.f32.mrb[11].mxu0  ;;  %v835_v44 = vmax.f32 %v828_v24, 0.0  ;;  %v861_v26 = vunpack.c.l.bf16 %v853_v54  ;;  %v1186_v38 = vld [vmem:[%s3869_s4 + $0x28] sm:$0xff] }
 0x285   :  { %v833_v39 = vmax.f32 %v787_v30, 0.0  ;;  %v838_v40 = vpack.c.bf16 %v834_v35, %v834_v35  ;;  %v50_v36 = vld [vmem:[%s3869_s4 + $0x10] sm:$0xff] }
 0x286   :  { %v836_v1 = vpack.c.bf16 %v832_v34, %v832_v34  ;;  %v839_v45 = vpack.c.bf16 %v835_v44, %v835_v44 }
 0x287   :  { %v837_v41 = vpack.c.bf16 %v833_v39, %v833_v39  ;;  %842 = vst [vmem:[#allocation2 + $0x10] sm:$0xf] %v838_v40  ;;  %v51_v39 = vld [vmem:[%s3869_s4 + $0x18] sm:$0xff] }
 0x288   :  { %840 = vst [vmem:[#allocation2] sm:$0xf] %v836_v1  ;;  %843 = vst [vmem:[#allocation2 + $0x18] sm:$0xf] %v839_v45 }
 0x289   :  { %841 = vst [vmem:[#allocation2 + $0x8] sm:$0xf] %v837_v41 }
 0x28e   :  { %v866_v3 = vld [vmem:[#allocation2 + $0x10] sm:$0xf] }
 0x28f   :  { %v864_v63 = vld [vmem:[#allocation2] sm:$0xf]  ;;  %v870_v21 = vunpack.c.l.bf16 %v866_v3  ;;  %v867_v17 = vld [vmem:[#allocation2 + $0x18] sm:$0xf] }
 0x290   :  { %v868_v9 = vunpack.c.l.bf16 %v864_v63  ;;  %v865_v25 = vld [vmem:[#allocation2 + $0x8] sm:$0xf]  ;;  %v871_v43 = vunpack.c.l.bf16 %v867_v17 }
 0x291   :  { %v869_v42 = vunpack.c.l.bf16 %v865_v25  ;;  %v3471_v24 = vadd.f32 %v870_v21, %v862_v7 }
 0x292   :  { %v3469_v30 = vadd.f32 %v868_v9, %v860_v56  ;;  %v3475_v32 = vadd.f32 %v871_v43, %v863_v28 }
 0x293   :  { %v3473_v31 = vadd.f32 %v869_v42, %v861_v26 }
 0x294   :  { %v2687_v34 = vpack.i.bf16 %v3475_v32, %v3471_v24 }
 0x295   :  { %v2682_v35 = vpack.i.bf16 %v3473_v31, %v3469_v30 }
 0x296   :  { %2688 = vrot.lane.b32.xlu0 %v2687_v34, %s2912_s29 }
 0x297   :  { %2683 = vrot.lane.b32.xlu1 %v2682_v35, %s2912_s29 }
 0x29a   :  { %2698 = vrot.lane.b32.xlu0 %v2687_v34, %s2911_s28 }
 0x29b   :  { %2693 = vrot.lane.b32.xlu1 %v2682_v35, %s2911_s28 }
 0x29e   :  { %2708 = vrot.lane.b32.xlu0 %v2687_v34, %s2913_s30 }
 0x29f   :  { %2703 = vrot.lane.b32.xlu1 %v2682_v35, %s2913_s30 }
 0x2a2   :  { %2718 = vrot.lane.b32.xlu0 %v2687_v34, %s2914_s6 }
 0x2a3   :  { %2713 = vrot.lane.b32.xlu1 %v2682_v35, %s2914_s6 }
 0x2a6   :  { %2728 = vrot.lane.b32.xlu0 %v2687_v34, %s2915_s7 }
 0x2a7   :  { %2723 = vrot.lane.b32.xlu1 %v2682_v35, %s2915_s7 }
 0x2aa   :  { %2738 = vrot.lane.b32.xlu0 %v2687_v34, %s2916_s8 }
 0x2ab   :  { %2733 = vrot.lane.b32.xlu1 %v2682_v35, %s2916_s8 }
 0x2ae   :  { %2748 = vrot.lane.b32.xlu0 %v2687_v34, %s2917_s2 }
 0x2af   :  { %2743 = vrot.lane.b32.xlu1 %v2682_v35, %s2917_s2 }
 0x2b2   :  { %2758 = vrot.lane.b32.xlu0 %v2687_v34, %s2918_s11 }
 0x2b3   :  { %2753 = vrot.lane.b32.xlu1 %v2682_v35, %s2918_s11 }
 0x2b6   :  { %64 = vperm.xlu0 %2601, %v50_v36  }
 0x2b7   :  { %1189 = vperm.xlu1 %2762, %v1186_v38  }
 0x2bb   :  { %69 = vperm.xlu1 %2762, %v51_v39  }
 0x308   :  { %v2689_v44 = vpop.permute.xlu0 %2688 }
 0x309   :  { %v2684_v1 = vpop.permute.xlu1 %2683  ;;  %v2691_v40 = vunpack.i.h.bf16 %v2689_v44  ;;  %v2690_v41 = vunpack.i.l.bf16 %v2689_v44 }
 0x30a   :  { %v2686_v45 = vunpack.i.h.bf16 %v2684_v1  ;;  %v2685_v47 = vunpack.i.l.bf16 %v2684_v1 }
 0x30b   :  { %v884_v57 = vsel %vm4010_vm3, %v2690_v41, %v2691_v40  ;;  %vm4017_vm3 = vmmov %vm4015_vm0 }
 0x30c   :  { %v2699_v48 = vpop.permute.xlu0 %2698  ;;  %v885_v63 = vsel %vm4011_vm7, %v2686_v45, %v2690_v41  ;;  %v886_v3 = vsel %vm4012_vm5, %v2685_v47, %v2686_v45  ;;  %v887_v56 = vsel %vm4013_vm15, %v2691_v40, %v2685_v47  ;;  %vm4021_vm7 = vnez %v3940_v59 }
 0x30d   :  { %v2694_v49 = vpop.permute.xlu1 %2693  ;;  %v2701_v18 = vunpack.i.h.bf16 %v2699_v48  ;;  %v2700_v51 = vunpack.i.l.bf16 %v2699_v48  ;;  %vm4022_vm5 = vcmp.lt.s32.totalorder %v3044_v55, 15 }
 0x30e   :  { %v2696_v53 = vunpack.i.h.bf16 %v2694_v49  ;;  %v2695_v54 = vunpack.i.l.bf16 %v2694_v49  ;;  %vm4023_vm15 = vmmov %vm4022_vm5 }
 0x30f   :  { %v918_v7 = vsel %vm4014_vm10, %v2700_v51, %v2701_v18  ;;  %vm4018_vm10 = vnez %v3916_v16 }
 0x310   :  { %v919_v9 = vsel %vm4015_vm0, %v2696_v53, %v2700_v51  ;;  %v920_v21 = vsel %vm4016_vm8, %v2695_v54, %v2696_v53  ;;  %v921_v25 = vsel %vm4017_vm3, %v2701_v18, %v2695_v54  ;;  %v2494_v17 = vpack.c.bf16 %v918_v7, %v884_v57  ;;  %v2709_v43 = vpop.permute.xlu0 %2708  ;;  %vm4024_vm3 = vmmov %vm4022_vm5 }
 0x311   :  { %v2470_v26 = vpack.c.bf16 %v920_v21, %v886_v3  ;;  %v2473_v28 = vpack.c.bf16 %v921_v25, %v887_v56  ;;  %v2497_v42 = vpack.c.bf16 %v919_v9, %v885_v63  ;;  %v2704_v34 = vpop.permute.xlu1 %2703  ;;  %v2711_v35 = vunpack.i.h.bf16 %v2709_v43 }
 0x312   :  { %v2710_v36 = vunpack.i.l.bf16 %v2709_v43  ;;  %v2706_v38 = vunpack.i.h.bf16 %v2704_v34  ;;  %v2705_v39 = vunpack.i.l.bf16 %v2704_v34  ;;  %vm4019_vm0 = vnez %v3936_v50 }
 0x313   :  { %2471 = vmatprep.subr.msk.bf16.mxu0 %vm4018_vm10, %v2470_v26  ;;  %2495 = vmatprep.subr.msk.bf16.mxu1 %vm4019_vm0, %v2494_v17  ;;  %vm4020_vm8 = vnez %v3930_v37 }
 0x314   :  { %2474 = vmatpush1.bf16.msk.msra.mxu0 %vm4020_vm8, %v2473_v28  ;;  %2498 = vmatpush1.bf16.msk.msra.mxu1 %vm4021_vm7, %v2497_v42  ;;  %v2719_v44 = vpop.permute.xlu0 %2718  ;;  %v952_v48 = vsel %vm4022_vm5, %v2710_v36, %v2711_v35  ;;  %v953_v49 = vsel %vm4023_vm15, %v2706_v38, %v2710_v36  ;;  %v954_v18 = vsel %vm4024_vm3, %v2705_v39, %v2706_v38  ;;  %vm4025_vm8 = vmmov %vm4024_vm3  ;;  %vm4026_vm7 = vcmp.lt.s32.totalorder %v3044_v55, 1 }
 0x315   :  { %v2714_v1 = vpop.permute.xlu1 %2713  ;;  %v2721_v40 = vunpack.i.h.bf16 %v2719_v44  ;;  %v2720_v41 = vunpack.i.l.bf16 %v2719_v44  ;;  %v955_v51 = vsel %vm4025_vm8, %v2711_v35, %v2705_v39  ;;  %vm4027_vm0 = vmmov %vm4026_vm7  ;;  %vm4030_vm8 = vnez %v3938_v58 }
 0x316   :  { %v2716_v45 = vunpack.i.h.bf16 %v2714_v1  ;;  %v2715_v47 = vunpack.i.l.bf16 %v2714_v1  ;;  %vm4028_vm10 = vmmov %vm4027_vm0  ;;  %vm4034_vm15 = vcmp.lt.s32.totalorder %v3044_v55, 127 }
 0x317   :  { %v986_v53 = vsel %vm4026_vm7, %v2720_v41, %v2721_v40  ;;  %vm4029_vm5 = vmmov %vm4027_vm0 }
 0x318   :  { %v987_v54 = vsel %vm4027_vm0, %v2716_v45, %v2720_v41  ;;  %v988_v57 = vsel %vm4028_vm10, %v2715_v47, %v2716_v45  ;;  %v989_v63 = vsel %vm4029_vm5, %v2721_v40, %v2715_v47  ;;  %v2500_v3 = vpack.c.bf16 %v986_v53, %v952_v48  ;;  %v2729_v21 = vpop.permute.xlu0 %2728  ;;  %vm4035_vm3 = vmmov %vm4034_vm15 }
 0x319   :  { %v2476_v56 = vpack.c.bf16 %v988_v57, %v954_v18  ;;  %v2479_v7 = vpack.c.bf16 %v989_v63, %v955_v51  ;;  %v2503_v9 = vpack.c.bf16 %v987_v54, %v953_v49  ;;  %v2724_v25 = vpop.permute.xlu1 %2723  ;;  %v2731_v17 = vunpack.i.h.bf16 %v2729_v21  ;;  %vm4036_vm5 = vmmov %vm4035_vm3 }
 0x31a   :  { %v2730_v26 = vunpack.i.l.bf16 %v2729_v21  ;;  %v2726_v28 = vunpack.i.h.bf16 %v2724_v25  ;;  %v2725_v42 = vunpack.i.l.bf16 %v2724_v25  ;;  %2501 = vmatprep.subr.msk.bf16.mxu1 %vm3253_vm12, %v2500_v3  ;;  %vm2919_vm10 = vmmov 1  }
 0x31b   :  { %2477 = vmatprep.subr.msk.bf16.mxu0 %vm4030_vm8, %v2476_v56  ;;  %vm4031_vm0 = vnez %v3920_v22  ;;  %vm4037_vm8 = vmmov %vm4035_vm3  ;;  %vm4038_vm12 = vnez %v3957_v19  ;;  %v4040_v22 = vmov 0 }
 0x31c   :  { %vm3553_vm7 = vmpackc.low %vm4031_vm0, %vm2919_vm10  ;;  %v1038_v34 = vsel %vm4034_vm15, %v2730_v26, %v2731_v17  ;;  %v1039_v35 = vsel %vm4035_vm3, %v2726_v28, %v2730_v26  ;;  %v1040_v36 = vsel %vm4036_vm5, %v2725_v42, %v2726_v28  ;;  %v1041_v38 = vsel %vm4037_vm8, %v2731_v17, %v2725_v42  ;;  %2480 = vmatpush1.bf16.msk.msra.mxu0 %vm4038_vm12, %v2479_v7  ;;  %v2739_v41 = vpop.permute.xlu0 %2738 }
 0x31d   :  { %vm4039_vm0 = vnez %v3942_v61  ;;  %v2509_v39 = vpack.c.bf16 %v1038_v34, %v3471_v24  ;;  %v2482_v44 = vpack.c.bf16 %v1039_v35, %v3473_v31  ;;  %v2485_v1 = vpack.c.bf16 %v1040_v36, %v3469_v30  ;;  %v2734_v45 = vpop.permute.xlu1 %2733  ;;  %vm3590_vm5 = vmpackc.low %vm3972_vm2, %vm2919_vm10 }
 0x31e   :  { %vm3570_vm11 = vmpackc.low %vm4039_vm0, %vm2919_vm10  ;;  %v2506_v40 = vpack.c.bf16 %v1041_v38, %v3475_v32  ;;  %vm4042_vm8 = vnez %v3965_v33  ;;  %vm4043_vm15 = vnez %v3944_v4  ;;  %v4044_v61 = vmov 0 }
 0x31f   :  { %v4041_v22 = vsel %vm3570_vm11, 4294967295, %v4040_v22  ;;  %2504 = vmatpush1.bf16.msk.msra.mxu1 %vm4042_vm8, %v2503_v9  ;;  %vm3583_vm3 = vmpackc.low %vm4043_vm15, %vm2919_vm10  ;;  %v4046_v24 = vmov 0  ;;  %v2741_v30 = vunpack.i.h.bf16 %v2739_v41  ;;  %v2740_v31 = vunpack.i.l.bf16 %v2739_v41  ;;  %2483 = vmatprep.subr.msk.bf16.mxu0 %vm3553_vm7, %v2482_v44 }
 0x320   :  { %v4045_v61 = vsel %vm3583_vm3, 4294967295, %v4044_v61  ;;  %v4047_v24 = vsel %vm3590_vm5, 4294967295, %v4046_v24  ;;  %v2736_v32 = vunpack.i.h.bf16 %v2734_v45  ;;  %v2735_v47 = vunpack.i.l.bf16 %v2734_v45  ;;  %2507 = vmatprep.subr.msk.bf16.mxu1 %vm3570_vm11, %v2506_v40  ;;  %2486 = vmatpush1.bf16.msk.msra.mxu0 %vm3583_vm3, %v2485_v1  ;;  %v2749_v4 = vpop.permute.xlu0 %2748 }
 0x321   :  { %v2744_v5 = vpop.permute.xlu1 %2743  ;;  %v2751_v48 = vunpack.i.h.bf16 %v2749_v4  ;;  %v2750_v49 = vunpack.i.l.bf16 %v2749_v4  ;;  %vm4048_vm2 = vcmp.lt.s32.totalorder %v3044_v55, 113 }
 0x322   :  { %v2746_v18 = vunpack.i.h.bf16 %v2744_v5  ;;  %v2745_v51 = vunpack.i.l.bf16 %v2744_v5  ;;  %v1072_v53 = vsel %vm4048_vm2, %v2740_v31, %v2741_v30  ;;  %vm4049_vm10 = vmmov %vm4048_vm2 }
 0x323   :  { %2510 = vmatpush1.bf16.msk.msra.mxu1 %vm3590_vm5, %v2509_v39  ;;  %v1073_v54 = vsel %vm4049_vm10, %v2736_v32, %v2740_v31  ;;  %vm4050_vm0 = vmmov %vm4048_vm2  ;;  %vm4052_vm5 = vcmp.lt.s32.totalorder %v3044_v55, 112 }
 0x324   :  { %v1074_v57 = vsel %vm4050_vm0, %v2735_v47, %v2736_v32  ;;  %vm4051_vm15 = vmmov %vm4050_vm0  ;;  %v1106_v3 = vsel %vm4052_vm5, %v2750_v49, %v2751_v48  ;;  %v2759_v28 = vpop.permute.xlu0 %2758  ;;  %vm4060_vm0 = vnez %v3986_v6 }
 0x325   :  { %v1075_v63 = vsel %vm4051_vm15, %v2741_v30, %v2735_v47  ;;  %vm4053_vm3 = vmmov %vm4052_vm5  ;;  %v2515_v21 = vpack.c.bf16 %v1106_v3, %v1072_v53  ;;  %v2754_v42 = vpop.permute.xlu1 %2753  ;;  %v2761_v34 = vunpack.i.h.bf16 %v2759_v28  ;;  %v2760_v35 = vunpack.i.l.bf16 %v2759_v28 }
 0x326   :  { %v1107_v56 = vsel %vm4053_vm3, %v2746_v18, %v2750_v49  ;;  %vm4054_vm11 = vmmov %vm4053_vm3  ;;  %v2756_v36 = vunpack.i.h.bf16 %v2754_v42  ;;  %v2755_v38 = vunpack.i.l.bf16 %v2754_v42  ;;  %vm4061_vm15 = vnez %v4006_v46 }
 0x327   :  { %v1108_v7 = vsel %vm4054_vm11, %v2745_v51, %v2746_v18  ;;  %vm4055_vm2 = vmmov %vm4053_vm3  ;;  %v2488_v25 = vpack.c.bf16 %v1107_v56, %v1073_v54  ;;  %vm4056_vm11 = vcmp.lt.s32.totalorder %v3044_v55, 111  ;;  %v1167_v18 = vld [vmem:[#allocation4 + $0x4] sm:$0xf] }
 0x328   :  { %v1109_v9 = vsel %vm4055_vm2, %v2751_v48, %v2745_v51  ;;  %v2491_v17 = vpack.c.bf16 %v1108_v7, %v1074_v57  ;;  %v1140_v39 = vsel %vm4056_vm11, %v2760_v35, %v2761_v34  ;;  %vm4057_vm3 = vmmov %vm4056_vm11  ;;  %vm4062_vm2 = vcmask 1043456  }
 0x329   :  { %v2512_v26 = vpack.c.bf16 %v1109_v9, %v1075_v63  ;;  %2489 = vmatprep.subr.msk.bf16.mxu0 %vm3312_vm13, %v2488_v25  ;;  %v1141_v44 = vsel %vm4057_vm3, %v2756_v36, %v2760_v35  ;;  %vm4058_vm5 = vmmov %vm4057_vm3  ;;  %v1146_v31 = vsel %vm4061_vm15, %v1140_v39, 0.0 }
 0x32a   :  { %v1142_v1 = vsel %vm4058_vm5, %v2755_v38, %v2756_v36  ;;  %vm4059_vm10 = vmmov %vm4057_vm3  ;;  %2492 = vmatpush1.bf16.msk.msra.mxu0 %vm3401_vm9, %v2491_v17  ;;  %v1145_v41 = vsel %vm3324_vm6, %v1141_v44, 0.0  ;;  %v2467_v5 = vpack.c.bf16 %v1146_v31, %v1146_v31 }
 0x32b   :  { %2513 = vmatprep.subr.msk.bf16.mxu1 %vm3387_vm1, %v2512_v26  ;;  %v1143_v40 = vsel %vm4059_vm10, %v2761_v34, %v2755_v38  ;;  %v1144_v30 = vsel %vm4060_vm0, %v1142_v1, 0.0  ;;  %v2466_v32 = vpack.c.bf16 %v1145_v41, %v1145_v41  ;;  %vm4063_vm11 = vmmov %vm4062_vm2  ;;  %vm4066_vm10 = vcmask 588800  }
 0x32c   :  { %v1147_v45 = vsel %vm3340_vm4, %v1143_v40, 0.0  ;;  %2516 = vmatpush1.bf16.msk.msra.mxu1 %vm3413_vm14, %v2515_v21  ;;  %v2465_v4 = vpack.c.bf16 %v1144_v30, %v1144_v30  ;;  %vm4064_vm3 = vmmov %vm4062_vm2 }
 0x32d   :  { %v2468_v47 = vpack.c.bf16 %v1147_v45, %v1147_v45  ;;  %2291 = vmatprep.subr.msk.bf16.mxu0 %vm4062_vm2, %v2466_v32  ;;  %vm4065_vm5 = vmmov %vm4062_vm2 }
 0x32e   :  { %v1286_v48 = vsel %vm4064_vm3, %v2465_v4, 0  ;;  %v1292_v49 = vsel %vm4065_vm5, %v2467_v5, 0  ;;  %vm4067_vm0 = vmmov %vm4066_vm10  ;;  %vm4072_vm5 = vcmp.lt.s32.totalorder %v3044_v55, 16 }
 0x32f   :  { %2293 = vmatprep.subr.msk.bf16.mxu1 %vm4063_vm11, %v2468_v47  ;;  %1306 = vmatpush1.bf16.msra.mxu0 %v1286_v48  ;;  %vm4074_vm15 = vmmov %vm4072_vm5 }
 0x330   :  { %1347 = vmatpush1.bf16.msra.mxu1 %v1292_v49 }
 0x332   :  { %2292 = vmatmul.mubr.msk.bf16.vlgmr.msra.gmra.mrb[12].mxu0 %vm4066_vm10, %v1167_v18  ;;  %vm4073_vm10 = vmmov %vm4072_vm5 }
 0x333   :  { %2294 = vmatmul.mubr.msk.bf16.vlgmr.msra.gmra.mrb[12].mxu1 %vm4067_vm0, %v1167_v18  ;;  %1888 = vmatprep.mubr.bf16.mxu0 %v2910_v0  ;;  %vm4068_vm0 = vcmp.lt.s32.totalorder %v3044_v55, 17 }
 0x334   :  { %1929 = vmatprep.mubr.bf16.mxu1 %v2910_v0  ;;  %vm4069_vm2 = vmmov %vm4068_vm0 }
 0x335   :  { %v65_v51 = vpop.permute.xlu0 %64  ;;  %vm4070_vm11 = vmmov %vm4068_vm0 }
 0x336   :  { %v1190_v53 = vpop.permute.xlu1 %1189  ;;  %v174_v54 = vadd.f32 %v3453_v10, %v65_v51  ;;  %v176_v57 = vadd.f32 %v3457_v11, %v65_v51  ;;  %v227_v63 = vadd.f32 %v3455_v23, %v65_v51  ;;  %v229_v3 = vadd.f32 %v3459_v12, %v65_v51  ;;  %vm4071_vm3 = vmmov %vm4068_vm0 }
 0x338   :  { %v243_v17 = vmax.f32 %v174_v54, 0.0  ;;  %v244_v26 = vmax.f32 %v176_v57, 0.0  ;;  %v245_v28 = vmax.f32 %v227_v63, 0.0  ;;  %v246_v42 = vmax.f32 %v229_v3, 0.0 }
 0x33a   :  { %v70_v56 = vpop.permute.xlu1 %69 }
 0x33b   :  { %v178_v7 = vadd.f32 %v3461_v13, %v70_v56  ;;  %v180_v9 = vadd.f32 %v3465_v15, %v70_v56  ;;  %v231_v21 = vadd.f32 %v3463_v14, %v70_v56  ;;  %v233_v25 = vadd.f32 %v3467_v20, %v70_v56 }
 0x33d   :  { %v247_v10 = vmax.f32 %v178_v7, 0.0  ;;  %v248_v34 = vmax.f32 %v180_v9, 0.0  ;;  %v249_v11 = vmax.f32 %v231_v21, 0.0  ;;  %v250_v35 = vmax.f32 %v233_v25, 0.0 }
 0x33f   :  { %v255_v23 = vpack.c.bf16 %v247_v10, %v243_v17  ;;  %v256_v36 = vpack.c.bf16 %v248_v34, %v244_v26  ;;  %v257_v12 = vpack.c.bf16 %v249_v11, %v245_v28  ;;  %v258_v38 = vpack.c.bf16 %v250_v35, %v246_v42 }
 0x341   :  { %263 = vst [vmem:[#allocation2 + $0x20] sm:$0xff] %v255_v23  ;;  %264 = vst [vmem:[#allocation2 + $0x28] sm:$0xff] %v256_v36 }
 0x342   :  { %265 = vst [vmem:[#allocation2 + $0x30] sm:$0xff] %v257_v12  ;;  %266 = vst [vmem:[#allocation2 + $0x38] sm:$0xff] %v258_v38 }
 0x349   :  { %v1405_v56 = vld [vmem:[#allocation2 + $0x30] ss:$8 sps:$4 sm:$0xff]  }
 0x34a   :  { %v1409_v34 = vunpack.c.l.bf16 %v1405_v56  ;;  %v1410_v36 = vunpack.c.h.bf16 %v1405_v56 }
 0x405   :  { %v1331_v13 = vpop.f32.mrb[12].mxu0 }
 0x406   :  { %v1372_v14 = vpop.f32.mrb[12].mxu1  ;;  %v1332_v15 = vadd.f32 %v1331_v13, %v1190_v53  ;;  %v1333_v39 = vpop.f32.mrb[13].mxu0 }
 0x407   :  { %v1373_v20 = vadd.f32 %v1372_v14, %v1190_v53  ;;  %v1374_v44 = vpop.f32.mrb[13].mxu1  ;;  %v1334_v1 = vadd.f32 %v1333_v39, %v1190_v53  ;;  %v1335_v41 = vpop.f32.mrb[14].mxu0 }
 0x408   :  { %v1375_v40 = vadd.f32 %v1374_v44, %v1190_v53  ;;  %v1376_v45 = vpop.f32.mrb[14].mxu1  ;;  %v1379_v30 = vmax.f32 %v1332_v15, 0.0  ;;  %v1336_v32 = vpop.f32.mrb[15].mxu0  ;;  %v1403_v53 = vld [vmem:[#allocation2 + $0x20] ss:$8 sps:$4 sm:$0xff]  }
 0x409   :  { %v1381_v31 = vmax.f32 %v1373_v20, 0.0  ;;  %v1377_v47 = vpop.f32.mrb[15].mxu1  ;;  %v1380_v4 = vmax.f32 %v1334_v1, 0.0  ;;  %v1407_v10 = vunpack.c.l.bf16 %v1403_v53  ;;  %v1408_v23 = vunpack.c.h.bf16 %v1403_v53  ;;  %v1962_v1 = vld [vmem:[%s3869_s4 + $0x38] sm:$0xff]  ;;  %v1964_v41 = vld [vmem:[%s3869_s4 + $0x48] sm:$0xff]  ;;  %v1963_v45 = vld [vmem:[%s3869_s4 + $0x40] sm:$0xff] }
 0x40a   :  { %v1382_v5 = vmax.f32 %v1375_v40, 0.0  ;;  %v1383_v48 = vpack.c.bf16 %v1379_v30, %v1379_v30  ;;  %v1745_v40 = vld [vmem:[%s3869_s4 + $0x30] sm:$0xff] }
 0x40b   :  { %v1385_v49 = vpack.c.bf16 %v1381_v31, %v1381_v31  ;;  %v1384_v18 = vpack.c.bf16 %v1380_v4, %v1380_v4  ;;  %v1965_v30 = vld [vmem:[%s3869_s4 + $0x50] sm:$0xff] }
 0x40c   :  { %v1386_v51 = vpack.c.bf16 %v1382_v5, %v1382_v5  ;;  %v1391_v54 = vrot.slane %v1383_v48, 4 }
 0x40d   :  { %v1393_v57 = vrot.slane %v1385_v49, 4  ;;  %v1392_v63 = vrot.slane %v1384_v18, 4 }
 0x40e   :  { %v1394_v3 = vrot.slane %v1386_v51, 4  ;;  %1399 = vst [vmem:[#allocation2] sm:$0xf0] %v1391_v54 }
 0x40f   :  { %1401 = vst [vmem:[#allocation2 + $0x10] sm:$0xf0] %v1393_v57  ;;  %1400 = vst [vmem:[#allocation2 + $0x8] sm:$0xf0] %v1392_v63 }
 0x410   :  { %1402 = vst [vmem:[#allocation2 + $0x18] sm:$0xf0] %v1394_v3 }
 0x415   :  { %v1411_v7 = vld [vmem:[#allocation2] sm:$0xf0] }
 0x416   :  { %v1413_v9 = vld [vmem:[#allocation2 + $0x10] sm:$0xf0]  ;;  %v1419_v21 = vrot.slane %v1411_v7, 4  ;;  %v1412_v17 = vld [vmem:[#allocation2 + $0x8] sm:$0xf0] }
 0x417   :  { %v1421_v25 = vrot.slane %v1413_v9, 4  ;;  %v1414_v26 = vld [vmem:[#allocation2 + $0x18] sm:$0xf0]  ;;  %v1420_v28 = vrot.slane %v1412_v17, 4  ;;  %v1955_v2 = vld [vmem:[#allocation2 + $0x8] sm:$0xff] }
 0x418   :  { %v1422_v42 = vrot.slane %v1414_v26, 4  ;;  %v1427_v11 = vunpack.c.l.bf16 %v1419_v21 }
 0x419   :  { %v1429_v35 = vunpack.c.l.bf16 %v1421_v25  ;;  %v1428_v12 = vunpack.c.l.bf16 %v1420_v28 }
 0x41a   :  { %v1430_v38 = vunpack.c.l.bf16 %v1422_v42  ;;  %v3660_v14 = vadd.f32 %v1427_v11, %v1407_v10 }
 0x41b   :  { %v3658_v13 = vadd.f32 %v1429_v35, %v1409_v34  ;;  %v3664_v20 = vadd.f32 %v1428_v12, %v1408_v23 }
 0x41c   :  { %v3662_v15 = vadd.f32 %v1430_v38, %v1410_v36 }
 0x41d   :  { %v2763_v44 = vpack.i.bf16 %v3664_v20, %v3660_v14 }
 0x41e   :  { %v2768_v39 = vpack.i.bf16 %v3662_v15, %v3658_v13 }
 0x41f   :  { %2764 = vrot.lane.b32.xlu0 %v2763_v44, %s2912_s29 }
 0x420   :  { %2769 = vrot.lane.b32.xlu1 %v2768_v39, %s2912_s29 }
 0x423   :  { %2774 = vrot.lane.b32.xlu0 %v2763_v44, %s2911_s28 }
 0x424   :  { %2779 = vrot.lane.b32.xlu1 %v2768_v39, %s2911_s28 }
 0x427   :  { %2784 = vrot.lane.b32.xlu0 %v2763_v44, %s2913_s30 }
 0x428   :  { %2789 = vrot.lane.b32.xlu1 %v2768_v39, %s2913_s30 }
 0x42b   :  { %2794 = vrot.lane.b32.xlu0 %v2763_v44, %s2914_s6 }
 0x42c   :  { %2799 = vrot.lane.b32.xlu1 %v2768_v39, %s2914_s6 }
 0x42f   :  { %2804 = vrot.lane.b32.xlu0 %v2763_v44, %s2915_s7 }
 0x430   :  { %2809 = vrot.lane.b32.xlu1 %v2768_v39, %s2915_s7 }
 0x433   :  { %2814 = vrot.lane.b32.xlu0 %v2763_v44, %s2916_s8 }
 0x434   :  { %2819 = vrot.lane.b32.xlu1 %v2768_v39, %s2916_s8 }
 0x437   :  { %2824 = vrot.lane.b32.xlu0 %v2763_v44, %s2917_s2 }
 0x438   :  { %2829 = vrot.lane.b32.xlu1 %v2768_v39, %s2917_s2 }
 0x43b   :  { %2834 = vrot.lane.b32.xlu0 %v2763_v44, %s2918_s11 }
 0x43c   :  { %2839 = vrot.lane.b32.xlu1 %v2768_v39, %s2918_s11 }
 0x43f   :  { %1748 = vperm.xlu0 %2601, %v1745_v40  }
 0x440   :  { %1968 = vperm.xlu1 %2762, %v1962_v1  }
 0x443   :  { %1973 = vperm.xlu0 %2601, %v1963_v45  }
 0x444   :  { %1978 = vperm.xlu1 %2762, %v1964_v41  }
 0x447   :  { %1983 = vperm.xlu0 %2601, %v1965_v30  }
 0x491   :  { %v2765_v32 = vpop.permute.xlu0 %2764 }
 0x492   :  { %v2770_v31 = vpop.permute.xlu1 %2769  ;;  %v2767_v5 = vunpack.i.h.bf16 %v2765_v32  ;;  %v2766_v48 = vunpack.i.l.bf16 %v2765_v32 }
 0x493   :  { %v2772_v47 = vunpack.i.h.bf16 %v2770_v31  ;;  %v2771_v4 = vunpack.i.l.bf16 %v2770_v31 }
 0x494   :  { %v1445_v56 = vsel %vm4070_vm11, %v2766_v48, %v2767_v5  ;;  %vm4077_vm11 = vnez %v3936_v50 }
 0x495   :  { %v2775_v18 = vpop.permute.xlu0 %2774  ;;  %v1443_v3 = vsel %vm4068_vm0, %v2771_v4, %v2772_v47  ;;  %v1444_v53 = vsel %vm4069_vm2, %v2767_v5, %v2771_v4  ;;  %v1446_v7 = vsel %vm4071_vm3, %v2772_v47, %v2766_v48  ;;  %vm4075_vm0 = vmmov %vm4072_vm5  ;;  %vm4076_vm2 = vnez %v3916_v16 }
 0x496   :  { %v2780_v49 = vpop.permute.xlu1 %2779  ;;  %v2777_v57 = vunpack.i.h.bf16 %v2775_v18  ;;  %v2776_v63 = vunpack.i.l.bf16 %v2775_v18  ;;  %vm4079_vm3 = vnez %v3940_v59 }
 0x497   :  { %v2782_v51 = vunpack.i.h.bf16 %v2780_v49  ;;  %v2781_v54 = vunpack.i.l.bf16 %v2780_v49 }
 0x498   :  { %v1479_v25 = vsel %vm4074_vm15, %v2776_v63, %v2777_v57  ;;  %vm4078_vm15 = vnez %v3930_v37 }
 0x499   :  { %v1477_v9 = vsel %vm4072_vm5, %v2781_v54, %v2782_v51  ;;  %v1478_v21 = vsel %vm4073_vm10, %v2777_v57, %v2781_v54  ;;  %v1480_v17 = vsel %vm4075_vm0, %v2782_v51, %v2776_v63  ;;  %v2538_v28 = vpack.c.bf16 %v1479_v25, %v1445_v56  ;;  %v2785_v11 = vpop.permute.xlu0 %2784 }
 0x49a   :  { %v2562_v26 = vpack.c.bf16 %v1477_v9, %v1443_v3  ;;  %v2541_v42 = vpack.c.bf16 %v1480_v17, %v1446_v7  ;;  %v2565_v10 = vpack.c.bf16 %v1478_v21, %v1444_v53  ;;  %v2790_v34 = vpop.permute.xlu1 %2789  ;;  %v2787_v36 = vunpack.i.h.bf16 %v2785_v11 }
 0x49b   :  { %v2792_v35 = vunpack.i.h.bf16 %v2790_v34  ;;  %v2791_v23 = vunpack.i.l.bf16 %v2790_v34  ;;  %v2786_v12 = vunpack.i.l.bf16 %v2785_v11  ;;  %2539 = vmatprep.subr.msk.bf16.mxu0 %vm4076_vm2, %v2538_v28  ;;  %vm4080_vm5 = vcmp.lt.s32.totalorder %v3044_v55, 15 }
 0x49c   :  { %2563 = vmatprep.subr.msk.bf16.mxu1 %vm4077_vm11, %v2562_v26  ;;  %2542 = vmatpush1.bf16.msk.msra.mxu0 %vm4078_vm15, %v2541_v42  ;;  %vm4081_vm10 = vmmov %vm4080_vm5  ;;  %vm4084_vm11 = vcmp.lt.s32.totalorder %v3044_v55, 1 }
 0x49d   :  { %2566 = vmatpush1.bf16.msk.msra.mxu1 %vm4079_vm3, %v2565_v10  ;;  %v2795_v39 = vpop.permute.xlu0 %2794  ;;  %v1511_v45 = vsel %vm4080_vm5, %v2791_v23, %v2792_v35  ;;  %v1512_v16 = vsel %vm4081_vm10, %v2787_v36, %v2791_v23  ;;  %vm4082_vm0 = vmmov %vm4080_vm5  ;;  %vm4088_vm10 = vnez %v3938_v58 }
 0x49e   :  { %v2800_v38 = vpop.permute.xlu1 %2799  ;;  %v2797_v40 = vunpack.i.h.bf16 %v2795_v39  ;;  %v2796_v41 = vunpack.i.l.bf16 %v2795_v39  ;;  %v1513_v50 = vsel %vm4082_vm0, %v2786_v12, %v2787_v36  ;;  %vm4083_vm2 = vmmov %vm4082_vm0  ;;  %vm4089_vm0 = vnez %v3963_v27 }
 0x49f   :  { %v2802_v44 = vunpack.i.h.bf16 %v2800_v38  ;;  %v2801_v1 = vunpack.i.l.bf16 %v2800_v38  ;;  %v1514_v37 = vsel %vm4083_vm2, %v2792_v35, %v2786_v12  ;;  %vm4085_vm15 = vmmov %vm4084_vm11  ;;  %vm4090_vm2 = vcmp.lt.s32.totalorder %v3044_v55, 127 }
 0x4a0   :  { %vm4086_vm3 = vmmov %vm4084_vm11 }
 0x4a1   :  { %v1545_v59 = vsel %vm4084_vm11, %v2801_v1, %v2802_v44  ;;  %v1546_v30 = vsel %vm4085_vm15, %v2797_v40, %v2801_v1  ;;  %v1547_v31 = vsel %vm4086_vm3, %v2796_v41, %v2797_v40  ;;  %vm4087_vm5 = vmmov %vm4086_vm3  ;;  %v2805_v18 = vpop.permute.xlu0 %2804 }
 0x4a2   :  { %v1548_v32 = vsel %vm4087_vm5, %v2802_v44, %v2796_v41  ;;  %v2568_v47 = vpack.c.bf16 %v1545_v59, %v1511_v45  ;;  %v2544_v4 = vpack.c.bf16 %v1547_v31, %v1513_v50  ;;  %v2571_v48 = vpack.c.bf16 %v1546_v30, %v1512_v16  ;;  %v2810_v49 = vpop.permute.xlu1 %2809  ;;  %vm4091_vm11 = vmmov %vm4090_vm2 }
 0x4a3   :  { %v2547_v5 = vpack.c.bf16 %v1548_v32, %v1514_v37  ;;  %v2812_v51 = vunpack.i.h.bf16 %v2810_v49  ;;  %v2811_v54 = vunpack.i.l.bf16 %v2810_v49  ;;  %v2807_v57 = vunpack.i.h.bf16 %v2805_v18  ;;  %vm4092_vm15 = vmmov %vm4090_vm2 }
 0x4a4   :  { %v2806_v63 = vunpack.i.l.bf16 %v2805_v18  ;;  %2545 = vmatprep.subr.msk.bf16.mxu0 %vm4088_vm10, %v2544_v4  ;;  %2569 = vmatprep.subr.msk.bf16.mxu1 %vm4089_vm0, %v2568_v47  ;;  %vm4093_vm3 = vmmov %vm4090_vm2  ;;  %vm4095_vm5 = vnez %v4045_v61  ;;  %vm4096_vm10 = vnez %v4047_v24 }
 0x4a5   :  { %v1597_v3 = vsel %vm4090_vm2, %v2811_v54, %v2812_v51  ;;  %v1598_v53 = vsel %vm4091_vm11, %v2807_v57, %v2811_v54  ;;  %2548 = vmatpush1.bf16.msk.msra.mxu0 %vm4038_vm12, %v2547_v5  ;;  %2572 = vmatpush1.bf16.msk.msra.mxu1 %vm4042_vm8, %v2571_v48  ;;  %v2815_v17 = vpop.permute.xlu0 %2814  ;;  %vm4094_vm12 = vnez %v4041_v22  ;;  %vm4097_vm8 = vcmp.lt.s32.totalorder %v3044_v55, 113  ;;  %v1726_v5 = vld [vmem:[#allocation4 + $0x8] sm:$0xf]  ;;  %v1956_v48 = vld [vmem:[#allocation2 + $0x10] sm:$0xff] }
 0x4a6   :  { %v1599_v56 = vsel %vm4092_vm15, %v2806_v63, %v2807_v57  ;;  %v1600_v7 = vsel %vm4093_vm3, %v2812_v51, %v2806_v63  ;;  %v2577_v58 = vpack.c.bf16 %v1597_v3, %v3658_v13  ;;  %v2550_v27 = vpack.c.bf16 %v1598_v53, %v3664_v20  ;;  %v2820_v25 = vpop.permute.xlu1 %2819 }
 0x4a7   :  { %v2553_v9 = vpack.c.bf16 %v1599_v56, %v3660_v14  ;;  %v2574_v21 = vpack.c.bf16 %v1600_v7, %v3662_v15  ;;  %v2822_v26 = vunpack.i.h.bf16 %v2820_v25  ;;  %v2821_v28 = vunpack.i.l.bf16 %v2820_v25 }
 0x4a8   :  { %v2817_v42 = vunpack.i.h.bf16 %v2815_v17  ;;  %v2816_v10 = vunpack.i.l.bf16 %v2815_v17  ;;  %2551 = vmatprep.subr.msk.bf16.mxu0 %vm3553_vm7, %v2550_v27  ;;  %vm4098_vm7 = vmmov %vm4097_vm8  ;;  %vm4101_vm11 = vcmp.lt.s32.totalorder %v3044_v55, 112 }
 0x4a9   :  { %2575 = vmatprep.subr.msk.bf16.mxu1 %vm4094_vm12, %v2574_v21  ;;  %2554 = vmatpush1.bf16.msk.msra.mxu0 %vm4095_vm5, %v2553_v9  ;;  %v2825_v33 = vpop.permute.xlu0 %2824  ;;  %v1631_v34 = vsel %vm4097_vm8, %v2821_v28, %v2822_v26  ;;  %vm4099_vm0 = vmmov %vm4098_vm7  ;;  %vm4105_vm5 = vcmp.lt.s32.totalorder %v3044_v55, 111 }
 0x4aa   :  { %2578 = vmatpush1.bf16.msk.msra.mxu1 %vm4096_vm10, %v2577_v58  ;;  %v2830_v19 = vpop.permute.xlu1 %2829  ;;  %v2827_v15 = vunpack.i.h.bf16 %v2825_v33  ;;  %v2826_v20 = vunpack.i.l.bf16 %v2825_v33  ;;  %v1632_v43 = vsel %vm4098_vm7, %v2817_v42, %v2821_v28  ;;  %v1633_v22 = vsel %vm4099_vm0, %v2816_v10, %v2817_v42  ;;  %vm4100_vm2 = vmmov %vm4099_vm0 }
 0x4ab   :  { %v2832_v13 = vunpack.i.h.bf16 %v2830_v19  ;;  %v2831_v14 = vunpack.i.l.bf16 %v2830_v19  ;;  %v1634_v61 = vsel %vm4100_vm2, %v2822_v26, %v2816_v10  ;;  %vm4102_vm15 = vmmov %vm4101_vm11 }
 0x4ac   :  { %vm4103_vm3 = vmmov %vm4101_vm11 }
 0x4ad   :  { %v1665_v24 = vsel %vm4101_vm11, %v2831_v14, %v2832_v13  ;;  %v1666_v11 = vsel %vm4102_vm15, %v2827_v15, %v2831_v14  ;;  %v1667_v35 = vsel %vm4103_vm3, %v2826_v20, %v2827_v15  ;;  %vm4104_vm12 = vmmov %vm4103_vm3  ;;  %v2835_v1 = vpop.permute.xlu0 %2834  ;;  %vm4117_vm11 = vcmask 261120  }
 0x4ae   :  { %v1668_v23 = vsel %vm4104_vm12, %v2832_v13, %v2826_v20  ;;  %v2583_v36 = vpack.c.bf16 %v1665_v24, %v1631_v34  ;;  %v2556_v12 = vpack.c.bf16 %v1666_v11, %v1632_v43  ;;  %v2559_v38 = vpack.c.bf16 %v1667_v35, %v1633_v22  ;;  %v2840_v44 = vpop.permute.xlu1 %2839  ;;  %vm4106_vm10 = vmmov %vm4105_vm5  ;;  %v2857_v20 = vld [vmem:[%s3868_s3] sm:$0xff]   ;;  %v2858_v34 = vld [vmem:[%s3868_s3 + $0x8] sm:$0xff]  }
 0x4af   :  { %v2580_v39 = vpack.c.bf16 %v1668_v23, %v1634_v61  ;;  %v2842_v40 = vunpack.i.h.bf16 %v2840_v44  ;;  %v2841_v41 = vunpack.i.l.bf16 %v2840_v44  ;;  %v2837_v45 = vunpack.i.h.bf16 %v2835_v1  ;;  %vm4107_vm8 = vmmov %vm4105_vm5  ;;  %v2108_v43 = vld [vmem:[%s3865_s0] sm:$0xff]  ;;  %v2109_v22 = vld [vmem:[%s3865_s0 + $0x8] sm:$0xff] }
 0x4b0   :  { %v2836_v16 = vunpack.i.l.bf16 %v2835_v1  ;;  %2557 = vmatprep.subr.msk.bf16.mxu0 %vm3312_vm13, %v2556_v12  ;;  %vm4108_vm7 = vmmov %vm4105_vm5  ;;  %vm4110_vm13 = vnez %v4006_v46  ;;  %v1954_v46 = vld [vmem:[#allocation2] sm:$0xff]  ;;  %v2111_v61 = vld [vmem:[%s3865_s0 + $0x18] sm:$0xff]  ;;  %v2116_v35 = vunpack.c.l.bf16 %v2108_v43  ;;  %v2118_v23 = vunpack.c.l.bf16 %v2109_v22 }
 0x4b1   :  { %2581 = vmatprep.subr.msk.bf16.mxu1 %vm3387_vm1, %v2580_v39  ;;  %v1699_v50 = vsel %vm4105_vm5, %v2841_v41, %v2842_v40  ;;  %v1700_v37 = vsel %vm4106_vm10, %v2837_v45, %v2841_v41  ;;  %2560 = vmatpush1.bf16.msk.msra.mxu0 %vm3401_vm9, %v2559_v38  ;;  %vm4109_vm1 = vnez %v3986_v6  ;;  %vm4111_vm9 = vcmask 1043456   ;;  %v1957_v6 = vld [vmem:[#allocation2 + $0x18] sm:$0xff]  ;;  %vm4118_vm15 = vmmov %vm4117_vm11 }
 0x4b2   :  { %v1701_v59 = vsel %vm4107_vm8, %v2836_v16, %v2837_v45  ;;  %v1702_v30 = vsel %vm4108_vm7, %v2842_v40, %v2836_v16  ;;  %v1704_v52 = vsel %vm3324_vm6, %v1700_v37, 0.0  ;;  %2584 = vmatpush1.bf16.msk.msra.mxu1 %vm3413_vm14, %v2583_v36  ;;  %v1705_v32 = vsel %vm4110_vm13, %v1699_v50, 0.0  ;;  %vm4112_vm0 = vmmov %vm4111_vm9 }
 0x4b3   :  { %v1706_v29 = vsel %vm3340_vm4, %v1702_v30, 0.0  ;;  %v1703_v31 = vsel %vm4109_vm1, %v1701_v59, 0.0  ;;  %v2534_v55 = vpack.c.bf16 %v1704_v52, %v1704_v52  ;;  %v2535_v8 = vpack.c.bf16 %v1705_v32, %v1705_v32  ;;  %vm4113_vm6 = vmmov %vm4112_vm0 }
 0x4b4   :  { %v2536_v47 = vpack.c.bf16 %v1706_v29, %v1706_v29  ;;  %v2533_v4 = vpack.c.bf16 %v1703_v31, %v1703_v31  ;;  %vm4114_vm4 = vmmov %vm4112_vm0  ;;  %vm4115_vm14 = vcmask 588800   ;;  %v2117_v38 = vunpack.c.h.bf16 %v2108_v43 }
 0x4b5   :  { %2333 = vmatprep.subr.msk.bf16.mxu0 %vm4111_vm9, %v2534_v55  ;;  %v1851_v60 = vsel %vm4114_vm4, %v2535_v8, 0  ;;  %vm4116_vm2 = vmmov %vm4115_vm14  ;;  %v2119_v39 = vunpack.c.h.bf16 %v2109_v22  ;;  %v2122_v16 = vunpack.c.l.bf16 %v2111_v61  ;;  %v2123_v29 = vunpack.c.h.bf16 %v2111_v61 }
 0x4b6   :  { %2335 = vmatprep.subr.msk.bf16.mxu1 %vm4112_vm0, %v2536_v47  ;;  %v1845_v62 = vsel %vm4113_vm6, %v2533_v4, 0  ;;  %vm4119_vm3 = vmmov %vm4117_vm11 }
 0x4b7   :  { %1865 = vmatpush1.bf16.msra.mxu0 %v1845_v62  ;;  %1906 = vmatpush1.bf16.msra.mxu1 %v1851_v60  ;;  %vm4120_vm12 = vmmov %vm4119_vm3 }
 0x4b8   :  { %2002 = vmatprep.subr.bf16.mxu0 %v1955_v2  ;;  %2055 = vmatprep.subr.bf16.mxu1 %v1957_v6 }
 0x4ba   :  { %2334 = vmatmul.mubr.msk.bf16.vlgmr.msra.gmra.mrb[16].mxu0 %vm4115_vm14, %v1726_v5  ;;  %2336 = vmatmul.mubr.msk.bf16.vlgmr.msra.gmra.mrb[16].mxu1 %vm4116_vm2, %v1726_v5  ;;  %v2112_v5 = vld [vmem:[%s3865_s0 + $0x20] sm:$0xff] }
 0x4bb   :  { %2003 = vmatpush1.bf16.msra.mxu0 %v1954_v46  ;;  %2056 = vmatpush1.bf16.msra.mxu1 %v1956_v48  ;;  %v2113_v46 = vld [vmem:[%s3865_s0 + $0x28] sm:$0xff] }
 0x4bc   :  { %2034 = vmatprep.mubr.bf16.mxu0 %v2910_v0  ;;  %2087 = vmatprep.mubr.bf16.mxu1 %v2910_v0 }
 0x4be   :  { %v1749_v49 = vpop.permute.xlu0 %1748 }
 0x4bf   :  { %v1969_v24 = vpop.permute.xlu1 %1968 }
 0x4c2   :  { %v1974_v11 = vpop.permute.xlu0 %1973 }
 0x58d   :  { %v1890_v18 = vpop.f32.mrb[16].mxu0  ;;  %v1931_v51 = vpop.f32.mrb[16].mxu1 }
 0x58e   :  { %v1891_v54 = vadd.f32 %v1890_v18, %v1749_v49  ;;  %v1932_v57 = vadd.f32 %v1931_v51, %v1749_v49  ;;  %v1892_v63 = vpop.f32.mrb[17].mxu0  ;;  %v1933_v3 = vpop.f32.mrb[17].mxu1 }
 0x58f   :  { %v1893_v53 = vadd.f32 %v1892_v63, %v1749_v49  ;;  %v1934_v56 = vadd.f32 %v1933_v3, %v1749_v49  ;;  %v1894_v7 = vpop.f32.mrb[18].mxu0  ;;  %v1935_v58 = vpop.f32.mrb[18].mxu1 }
 0x590   :  { %v1938_v27 = vmax.f32 %v1891_v54, 0.0  ;;  %v1940_v9 = vmax.f32 %v1932_v57, 0.0  ;;  %v1895_v21 = vpop.f32.mrb[19].mxu0  ;;  %v1936_v25 = vpop.f32.mrb[19].mxu1 }
 0x591   :  { %v1939_v17 = vmax.f32 %v1893_v53, 0.0  ;;  %v1941_v26 = vmax.f32 %v1934_v56, 0.0  ;;  %v2114_v53 = vld [vmem:[%s3865_s0 + $0x30] sm:$0xff]  ;;  %v2115_v56 = vld [vmem:[%s3865_s0 + $0x38] sm:$0xff]  ;;  %v1979_v7 = vpop.permute.xlu1 %1978  ;;  %v1984_v58 = vpop.permute.xlu0 %1983  ;;  %v2124_v21 = vunpack.c.l.bf16 %v2112_v5  ;;  %v2126_v25 = vunpack.c.l.bf16 %v2113_v46 }
 0x592   :  { %v1942_v28 = vpack.c.bf16 %v1938_v27, %v1938_v27  ;;  %v1944_v42 = vpack.c.bf16 %v1940_v9, %v1940_v9 }
 0x593   :  { %v1943_v10 = vpack.c.bf16 %v1939_v17, %v1939_v17  ;;  %v1945_v19 = vpack.c.bf16 %v1941_v26, %v1941_v26 }
 0x594   :  { %1946 = vst [vmem:[#allocation2 + $0x20] sm:$0xf] %v1942_v28  ;;  %1948 = vst [vmem:[#allocation2 + $0x30] sm:$0xf] %v1944_v42 }
 0x595   :  { %1947 = vst [vmem:[#allocation2 + $0x28] sm:$0xf] %v1943_v10  ;;  %1949 = vst [vmem:[#allocation2 + $0x38] sm:$0xf] %v1945_v19  ;;  %v2125_v10 = vunpack.c.h.bf16 %v2112_v5  ;;  %v2127_v19 = vunpack.c.h.bf16 %v2113_v46 }
 0x59b   :  { %v1958_v14 = vld [vmem:[#allocation2 + $0x20] sm:$0xff]  ;;  %v1960_v15 = vld [vmem:[#allocation2 + $0x30] sm:$0xff] }
 0x59c   :  { %v1959_v33 = vld [vmem:[#allocation2 + $0x28] sm:$0xff]  ;;  %v1961_v13 = vld [vmem:[#allocation2 + $0x38] sm:$0xff] }
 0x59d   :  { %2004 = vmatprep.subr.bf16.mxu0 %v1959_v33  ;;  %2057 = vmatprep.subr.bf16.mxu1 %v1961_v13 }
 0x59e   :  { %2005 = vmatpush1.bf16.msra.mxu0 %v1958_v14  ;;  %2058 = vmatpush1.bf16.msra.mxu1 %v1960_v15 }
 0x5a1   :  { %2339 = vmatmul.mubr.msk.bf16.vlgmr.msra.gmra.mrb[20].mxu0 %vm4117_vm11, %v2857_v20  ;;  %2341 = vmatmul.mubr.msk.bf16.vlgmr.msra.gmra.mrb[20].mxu1 %vm4118_vm15, %v2857_v20  ;;  %v2128_v20 = vunpack.c.l.bf16 %v2114_v53 }
 0x5a2   :  { %2044 = vmatprep.mubr.bf16.mxu0 %v2910_v0  ;;  %2097 = vmatprep.mubr.bf16.mxu1 %v2910_v0  ;;  %v2110_v0 = vld [vmem:[%s3865_s0 + $0x10] sm:$0xff]  ;;  %s2920_s0 = smov [#allocation7]  }
 0x5a3   :  { %v2120_v45 = vunpack.c.l.bf16 %v2110_v0  ;;  %v2121_v52 = vunpack.c.h.bf16 %v2110_v0  ;;  %s2185_s20 = sshll.u32 %s2920_s0, 4  ;;  %s2186_s20 = int_to_ptr.vmem [resolvable:$true] %s2185_s20 }
 0x5a4   :  { %s2881_s21 = scalar_lea.vmem %s2186_s20, 2048  ;;  %p2886_p9 = scmp.lt.s32.totalorder %s2186_s20, %s2186_s20 }
 0x5a5   :  { %p2882_p8 = scmp.ne.s32.totalorder %s2186_s20, %s2881_s21  ;;  %p2887_p10 = scmp.lt.s32.totalorder %s2881_s21, %s2881_s21 }
 0x5a7   :  { %p2888_p11 = por %p2887_p10, %p2886_p9 }
 0x5a9   :  { %2340 = vmatmul.mubr.msk.bf16.gmra.mrb[24].mxu0 %vm4119_vm3, %v2858_v34  ;;  %2342 = vmatmul.mubr.msk.bf16.gmra.mrb[24].mxu1 %vm4120_vm12, %v2858_v34  ;;  %v2130_v34 = vunpack.c.l.bf16 %v2115_v56  ;;  %p2889_p12 = pnand %p2888_p11, %p2882_p8 }
 0x674   :  { %v2036_v36 = vpop.f32.mrb[20].mxu0  ;;  %v2089_v12 = vpop.f32.mrb[20].mxu1 }
 0x675   :  { %v2037_v44 = vadd.f32 %v2036_v36, %v1969_v24  ;;  %v2090_v1 = vadd.f32 %v2089_v12, %v1969_v24  ;;  %v2038_v40 = vpop.f32.mrb[21].mxu0  ;;  %v2091_v41 = vpop.f32.mrb[21].mxu1 }
 0x676   :  { %v2039_v50 = vadd.f32 %v2038_v40, %v1969_v24  ;;  %v2092_v37 = vadd.f32 %v2091_v41, %v1969_v24  ;;  %v2040_v59 = vpop.f32.mrb[22].mxu0  ;;  %v2093_v30 = vpop.f32.mrb[22].mxu1  ;;  %v2129_v24 = vunpack.c.h.bf16 %v2114_v53 }
 0x677   :  { %v2132_v31 = vadd.f32 %v2116_v35, %v2037_v44  ;;  %v2134_v32 = vadd.f32 %v2118_v23, %v2090_v1  ;;  %v2041_v55 = vadd.f32 %v2040_v59, %v1974_v11  ;;  %v2094_v47 = vadd.f32 %v2093_v30, %v1974_v11  ;;  %v2042_v4 = vpop.f32.mrb[23].mxu0  ;;  %v2095_v8 = vpop.f32.mrb[23].mxu1 }
 0x678   :  { %v2133_v62 = vadd.f32 %v2117_v38, %v2039_v50  ;;  %v2135_v60 = vadd.f32 %v2119_v39, %v2092_v37  ;;  %v2043_v2 = vadd.f32 %v2042_v4, %v1974_v11  ;;  %v2096_v6 = vadd.f32 %v2095_v8, %v1974_v11 }
 0x679   :  { %v2148_v48 = vmax.f32 %v2132_v31, 0.0  ;;  %v2150_v49 = vmax.f32 %v2134_v32, 0.0  ;;  %v2136_v18 = vadd.f32 %v2120_v45, %v2041_v55  ;;  %v2138_v51 = vadd.f32 %v2122_v16, %v2094_v47 }
 0x67a   :  { %v2149_v54 = vmax.f32 %v2133_v62, 0.0  ;;  %v2151_v57 = vmax.f32 %v2135_v60, 0.0  ;;  %v2137_v63 = vadd.f32 %v2121_v52, %v2043_v2  ;;  %v2139_v3 = vadd.f32 %v2123_v29, %v2096_v6 }
 0x67b   :  { %2164 = vst [vmem:[#allocation7] sm:$0xff] %v2148_v48  ;;  %2166 = vst [vmem:[#allocation7 + $0x10] sm:$0xff] %v2150_v49  ;;  %v2152_v27 = vmax.f32 %v2136_v18, 0.0  ;;  %v2154_v9 = vmax.f32 %v2138_v51, 0.0  ;;  %v2131_v11 = vunpack.c.h.bf16 %v2115_v56 }
 0x67c   :  { %2165 = vst [vmem:[#allocation7 + $0x8] sm:$0xff] %v2149_v54  ;;  %2167 = vst [vmem:[#allocation7 + $0x18] sm:$0xff] %v2151_v57  ;;  %v2153_v17 = vmax.f32 %v2137_v63, 0.0  ;;  %v2155_v26 = vmax.f32 %v2139_v3, 0.0  ;;  %v2046_v28 = vpop.f32.mrb[24].mxu0  ;;  %v2099_v42 = vpop.f32.mrb[24].mxu1 }
 0x67d   :  { %2168 = vst [vmem:[#allocation7 + $0x20] sm:$0xff] %v2152_v27  ;;  %2170 = vst [vmem:[#allocation7 + $0x30] sm:$0xff] %v2154_v9  ;;  %v2047_v33 = vadd.f32 %v2046_v28, %v1979_v7  ;;  %v2100_v13 = vadd.f32 %v2099_v42, %v1979_v7  ;;  %v2048_v14 = vpop.f32.mrb[25].mxu0  ;;  %v2101_v15 = vpop.f32.mrb[25].mxu1 }
 0x67e   :  { %2169 = vst [vmem:[#allocation7 + $0x28] sm:$0xff] %v2153_v17  ;;  %2171 = vst [vmem:[#allocation7 + $0x38] sm:$0xff] %v2155_v26  ;;  %v2049_v43 = vadd.f32 %v2048_v14, %v1979_v7  ;;  %v2102_v22 = vadd.f32 %v2101_v15, %v1979_v7  ;;  %v2050_v0 = vpop.f32.mrb[26].mxu0  ;;  %v2103_v61 = vpop.f32.mrb[26].mxu1 }
 0x67f   :  { %v2140_v35 = vadd.f32 %v2124_v21, %v2047_v33  ;;  %v2142_v23 = vadd.f32 %v2126_v25, %v2100_v13  ;;  %v2051_v36 = vadd.f32 %v2050_v0, %v1984_v58  ;;  %v2104_v12 = vadd.f32 %v2103_v61, %v1984_v58  ;;  %v2052_v38 = vpop.f32.mrb[27].mxu0  ;;  %v2105_v39 = vpop.f32.mrb[27].mxu1 }
 0x680   :  { %v2141_v44 = vadd.f32 %v2125_v10, %v2049_v43  ;;  %v2143_v1 = vadd.f32 %v2127_v19, %v2102_v22  ;;  %v2053_v40 = vadd.f32 %v2052_v38, %v1984_v58  ;;  %v2106_v41 = vadd.f32 %v2105_v39, %v1984_v58 }
 0x681   :  { %v2156_v45 = vmax.f32 %v2140_v35, 0.0  ;;  %v2158_v16 = vmax.f32 %v2142_v23, 0.0  ;;  %v2144_v50 = vadd.f32 %v2128_v20, %v2051_v36  ;;  %v2146_v37 = vadd.f32 %v2130_v34, %v2104_v12 }
 0x682   :  { %v2157_v59 = vmax.f32 %v2141_v44, 0.0  ;;  %v2159_v30 = vmax.f32 %v2143_v1, 0.0  ;;  %v2145_v52 = vadd.f32 %v2129_v24, %v2053_v40  ;;  %v2147_v29 = vadd.f32 %v2131_v11, %v2106_v41 }
 0x683   :  { %2172 = vst [vmem:[#allocation7 + $0x40] sm:$0xff] %v2156_v45  ;;  %2174 = vst [vmem:[#allocation7 + $0x50] sm:$0xff] %v2158_v16  ;;  %v2160_v31 = vmax.f32 %v2144_v50, 0.0  ;;  %v2162_v32 = vmax.f32 %v2146_v37, 0.0 }
 0x684   :  { %2173 = vst [vmem:[#allocation7 + $0x48] sm:$0xff] %v2157_v59  ;;  %2175 = vst [vmem:[#allocation7 + $0x58] sm:$0xff] %v2159_v30  ;;  %v2161_v55 = vmax.f32 %v2145_v52, 0.0  ;;  %v2163_v47 = vmax.f32 %v2147_v29, 0.0 }
 0x685   :  { %2176 = vst [vmem:[#allocation7 + $0x60] sm:$0xff] %v2160_v31  ;;  %2178 = vst [vmem:[#allocation7 + $0x70] sm:$0xff] %v2162_v32 }
 0x686   :  { %2177 = vst [vmem:[#allocation7 + $0x68] sm:$0xff] %v2161_v55  ;;  %2179 = vst [vmem:[#allocation7 + $0x78] sm:$0xff] %v2163_v47 }
 0x687   :  { %2892 = shalt.err (!%p2889_p12)
}
 0x688   :  { %s2893_s24 = scalar_lea.hbm %s3870_s5, 2048 }
 0x689   :  { %p2894_p13 = scmp.ne.s32.totalorder %s3870_s5, %s2893_s24  ;;  %p2897_p0 = scmp.lt.u32.totalorder %s2893_s24, %s3870_s5 }
 0x68b   :  { %p2899_p1 = pnand %p2897_p0, %p2894_p13 }
 0x68d   :  { %2902 = shalt.err (!%p2899_p1)
}
 0x68e   :  { %s2921_s4 = smov 512   ;;  %s2922_s29 = smov 32  }
 0x68f   :  { %2191 = dma.vmem_to_hbm [thread:$0]  %s2186_s20, 2048, %s3870_s5, [#allocation6], %s2921_s4, %s2921_s4, %s2922_s29  }
 0x690   :  { %2905 = dma.done.wait [#allocation6], 2048  }
 0x691   :  { %2906 = vsyncadd [#allocation6], 4294965248 }
 0x692   :  { %2195 = vsyncpa [#allocation5], 1 }
 0x693   :  { %2196 = vsyncpa [#allocation6], 1 }

</bundles_post_ra>
